<compile_context>
chip_gen: v6e
topology: v6e:2x2x1
jax: 0.10.0
libtpu: 0.0.40
codegen_flags: <defaults>
</compile_context>

<pallas_src>
import functools
import math

import jax
import jax.numpy as jnp
from jax.experimental import pallas as pl
from jax.experimental.pallas import tpu as pltpu


# --------------------------------------------------------------------------
# In-kernel helpers
# --------------------------------------------------------------------------

def _ln(x, g, b, eps, relu=False):
    """Row-wise LayerNorm over the last dim (optionally fused ReLU)."""
    x = x.astype(jnp.float32)
    mu = jnp.mean(x, axis=-1, keepdims=True)
    var = jnp.mean(jnp.square(x - mu), axis=-1, keepdims=True)
    y = (x - mu) * jax.lax.rsqrt(var + eps)
    y = y * g.astype(jnp.float32) + b.astype(jnp.float32)
    if relu:
        y = jnp.maximum(y, 0.0)
    return y


# --------------------------------------------------------------------------
# Fused ViT backbone kernel: grid=(num_layers,), hidden state lives in VMEM
# --------------------------------------------------------------------------

def _vit_kernel(tok_ref, pw_ref, add_ref, bias_ref,
                ln1g_ref, ln1b_ref, wqkv_ref, bqkv_ref, wo_ref, bo_ref,
                ln2g_ref, ln2b_ref, w1_ref, b1_ref, w2_ref, b2_ref,
                lnfg_ref, lnfb_ref,
                out_ref, h_ref,
                *, B, S, nh, dh, eps):
    D = nh * dh
    l = pl.program_id(0)

    # ---- grid step 0: patch embed (conv-as-matmul) + CLS token + pos embed ----
    # tok rows: [zero "cls slot", patches...] per image; add rows carry
    # (cls + pos[0]) for cls slots and (patch_bias + pos[i]) for patch slots.
    @pl.when(l == 0)
    def _embed():
        h_ref[...] = (
            jnp.dot(tok_ref[...].astype(jnp.float32),
                    pw_ref[...].astype(jnp.float32),
                    preferred_element_type=jnp.float32)
            + add_ref[...].astype(jnp.float32))

    h = h_ref[...]                                   # (B*S, D) f32, VMEM resident

    # ---- self-attention block (pre-LN, HF ViTLayer) ----
    x1 = _ln(h, ln1g_ref[0], ln1b_ref[0], eps)
    qkv = (jnp.dot(x1, wqkv_ref[0].astype(jnp.float32),
                   preferred_element_type=jnp.float32)
           + bqkv_ref[0].astype(jnp.float32))        # (B*S, 3D)
    wo = wo_ref[0].astype(jnp.float32)
    bias = bias_ref[...]                             # (B*S, B*S) additive mask
    scale = 1.0 / math.sqrt(dh)

    attn = jnp.zeros((B * S, D), jnp.float32)
    for hd in range(nh):                             # nh small, fully unrolled
        q = qkv[:, hd * dh:(hd + 1) * dh]                    # (B*S, dh)
        k = qkv[:, D + hd * dh:D + (hd + 1) * dh]            # (B*S, dh)
        v = qkv[:, 2 * D + hd * dh:2 * D + (hd + 1) * dh]    # (B*S, dh)
        # contract over dh directly (no explicit k.T)
        s = jax.lax.dot_general(q, k, (((1,), (1,)), ((), ())),
                                preferred_element_type=jnp.float32) * scale
        s = s + bias                                 # block-diagonal per-image mask
        s = s - jnp.max(s, axis=-1, keepdims=True)
        p = jnp.exp(s)
        p = p * pl.reciprocal(jnp.sum(p, axis=-1, keepdims=True), approx=True)
        ctx = jnp.dot(p, v, preferred_element_type=jnp.float32)      # (B*S, dh)
        # fold the head back through its slice of the output projection
        attn = attn + jnp.dot(ctx, wo[hd * dh:(hd + 1) * dh, :],
                              preferred_element_type=jnp.float32)
    h = h + attn + bo_ref[0].astype(jnp.float32)

    # ---- MLP block ----
    x2 = _ln(h, ln2g_ref[0], ln2b_ref[0], eps)
    m = (jnp.dot(x2, w1_ref[0].astype(jnp.float32),
                 preferred_element_type=jnp.float32)
         + b1_ref[0].astype(jnp.float32))
    # TODO(synk): HF ViT uses exact erf-GELU; tanh-approx GELU used here.
    m = jax.nn.gelu(m, approximate=True)
    m = (jnp.dot(m, w2_ref[0].astype(jnp.float32),
                 preferred_element_type=jnp.float32)
         + b2_ref[0].astype(jnp.float32))
    h = h + m

    h_ref[...] = h

    # ---- last grid step: final LayerNorm on the CLS tokens -> (B, D) ----
    @pl.when(l == pl.num_programs(0) - 1)
    def _final():
        for b in range(B):                           # B tiny, unrolled
            cls_row = h[b * S:b * S + 1, :]          # (1, D)
            out_ref[pl.ds(b, 1), :] = _ln(
                cls_row, lnfg_ref[...], lnfb_ref[...], eps).astype(out_ref.dtype)


def vit_backbone(vit, images, cfg):
    """ViT backbone -> CLS token features (B, D), one pallas_call total."""
    B, C, H, W = images.shape
    p = cfg["patch"]
    gh, gw = H // p, W // p
    Np = gh * gw
    D, nh, L = cfg["hidden"], cfg["heads"], cfg["layers"]
    S = Np + 1
    BS = B * S

    # Patch extraction in (C, ph, pw) order == nn.Conv2d(kernel=stride=patch).
    x = images.reshape(B, C, gh, p, gw, p)
    x = x.transpose(0, 2, 4, 1, 3, 5).reshape(B, Np, C * p * p)
    # Insert a zero "CLS slot" row per image so the whole token sequence is one
    # matmul; the additive matrix supplies cls+pos (cls rows) / bias+pos (patches).
    tokens = jnp.concatenate(
        [jnp.zeros((B, 1, C * p * p), x.dtype), x], axis=1).reshape(BS, C * p * p)
    add = jnp.concatenate(
        [vit["cls"] + vit["pos"][0:1, :],
         vit["patch_b"] + vit["pos"][1:, :]], axis=0)          # (S, D)
    add = jnp.tile(add, (B, 1))                                # (B*S, D)

    # Block-diagonal additive attention bias: tokens attend only inside their
    # own image (0 inside the block, -1e30 outside). Precomputed once here so
    # the kernel does a single add per head instead of iota/compare per layer.
    img_id = jnp.arange(BS, dtype=jnp.int32) // S
    attn_bias = jnp.where(img_id[:, None] == img_id[None, :],
                          jnp.float32(0.0), jnp.float32(-1e30))  # (BS, BS)

    def full(a):
        return pl.BlockSpec(a.shape, lambda l, nd=a.ndim: (0,) * nd)

    def per_layer(a):
        return pl.BlockSpec((1,) + a.shape[1:],
                            lambda l, nd=a.ndim: (l,) + (0,) * (nd - 1))

    in_arrays = [tokens, vit["patch_w"], add, attn_bias,
                 vit["ln1_g"], vit["ln1_b"], vit["wqkv"], vit["bqkv"],
                 vit["wo"], vit["bo"], vit["ln2_g"], vit["ln2_b"],
                 vit["w1"], vit["b1"], vit["w2"], vit["b2"],
                 vit["lnf_g"], vit["lnf_b"]]
    in_specs = ([full(tokens), full(vit["patch_w"]), full(add), full(attn_bias)]
                + [per_layer(vit[k]) for k in
                   ["ln1_g", "ln1_b", "wqkv", "bqkv", "wo", "bo",
                    "ln2_g", "ln2_b", "w1", "b1", "w2", "b2"]]
                + [full(vit["lnf_g"]), full(vit["lnf_b"])])

    kernel = functools.partial(_vit_kernel, B=B, S=S, nh=nh, dh=D // nh, eps=1e-12)
    return pl.pallas_call(
        kernel,
        grid=(L,),
        out_shape=jax.ShapeDtypeStruct((B, D), jnp.float32),
        in_specs=in_specs,
        out_specs=pl.BlockSpec((B, D), lambda l: (0, 0)),
        scratch_shapes=[pltpu.VMEM((BS, D), jnp.float32)],   # resident hidden state
        compiler_params=pltpu.CompilerParams(dimension_semantics=("arbitrary",)),
    )(*in_arrays)


# --------------------------------------------------------------------------
# Fused head kernel: morph_encoder + fusion + output_layer in one launch
# --------------------------------------------------------------------------

def _head_kernel(img_ref, morph_ref,
                 mw_ref, mb_ref, mg_ref, mbt_ref,
                 f1wi_ref, f1wm_ref, f1b_ref, f1g_ref, f1bt_ref,
                 f2w_ref, f2b_ref, f2g_ref, f2bt_ref,
                 ow_ref, ob_ref,
                 out_ref, *, eps):
    img = img_ref[...].astype(jnp.float32)           # (B, D_vit)
    morph = morph_ref[...].astype(jnp.float32)       # (B, morph_dim)

    # morph_encoder: Linear -> LayerNorm -> ReLU -> Dropout(identity)
    m = (jnp.dot(morph, mw_ref[...].astype(jnp.float32),
                 preferred_element_type=jnp.float32) + mb_ref[...])
    m = _ln(m, mg_ref[...], mbt_ref[...], eps, relu=True)

    # fusion layer 1: cat([img, morph]) @ W == img @ W_img + morph @ W_morph
    f = (jnp.dot(img, f1wi_ref[...].astype(jnp.float32),
                 preferred_element_type=jnp.float32)
         + jnp.dot(m, f1wm_ref[...].astype(jnp.float32),
                   preferred_element_type=jnp.float32)
         + f1b_ref[...])
    f = _ln(f, f1g_ref[...], f1bt_ref[...], eps, relu=True)

    # fusion layer 2
    f = (jnp.dot(f, f2w_ref[...].astype(jnp.float32),
                 preferred_element_type=jnp.float32) + f2b_ref[...])
    f = _ln(f, f2g_ref[...], f2bt_ref[...], eps, relu=True)

    # output layer
    out = (jnp.dot(f, ow_ref[...].astype(jnp.float32),
                   preferred_element_type=jnp.float32) + ob_ref[...])
    out_ref[...] = out.astype(out_ref.dtype)


def fusion_head(params, img_features, morphology, cfg):
    B = morphology.shape[0]
    D = cfg["hidden"]
    out_dim = params["out_w"].shape[1]

    # Split the first fusion weight host-side: rows [0:D] multiply the image
    # features, rows [D:] multiply the morphology features (== concat matmul).
    f1w_img = params["fus1_w"][:D, :]
    f1w_mor = params["fus1_w"][D:, :]

    def full(a):
        return pl.BlockSpec(a.shape, lambda i, nd=a.ndim: (0,) * nd)

    args = [img_features, morphology,
            params["morph_w"], params["morph_b"],
            params["morph_ln_g"], params["morph_ln_b"],
            f1w_img, f1w_mor, params["fus1_b"],
            params["fus1_ln_g"], params["fus1_ln_b"],
            params["fus2_w"], params["fus2_b"],
            params["fus2_ln_g"], params["fus2_ln_b"],
            params["out_w"], params["out_b"]]

    return pl.pallas_call(
        functools.partial(_head_kernel, eps=1e-5),
        grid=(1,),
        out_shape=jax.ShapeDtypeStruct((B, out_dim), jnp.float32),
        in_specs=[full(a) for a in args],
        out_specs=pl.BlockSpec((B, out_dim), lambda i: (0, 0)),
    )(*args)


# --------------------------------------------------------------------------
# Deterministic parameter construction (synthetic, not a checkpoint)
# --------------------------------------------------------------------------

def make_params(cfg, morphology_dim, hidden_dim, output_dim, seed=0):
    key = jax.random.PRNGKey(seed)
    keys = iter(jax.random.split(key, 512))
    nk = lambda: next(keys)

    C, p, D, mlp = cfg["channels"], cfg["patch"], cfg["hidden"], cfg["mlp"]
    L = cfg["layers"]
    gh = cfg["image"] // p
    S = gh * gh + 1

    def lin(fan_in, fan_out, scale=0.05):
        kw, kb = jax.random.split(nk())
        w = jax.random.normal(kw, (fan_in, fan_out), jnp.float32) * scale
        b = jax.random.normal(kb, (1, fan_out), jnp.float32) * scale
        return w, b

    ones = lambda n: jnp.ones((1, n), jnp.float32)
    zeros = lambda n: jnp.zeros((1, n), jnp.float32)

    vit = {}
    vit["patch_w"], vit["patch_b"] = lin(C * p * p, D)
    vit["cls"] = jax.random.normal(nk(), (1, D), jnp.float32) * 0.02
    vit["pos"] = jax.random.normal(nk(), (S, D), jnp.float32) * 0.02
    vit["lnf_g"], vit["lnf_b"] = ones(D), zeros(D)

    per = {k: [] for k in ["ln1_g", "ln1_b", "wqkv", "bqkv", "wo", "bo",
                           "ln2_g", "ln2_b", "w1", "b1", "w2", "b2"]}
    for _ in range(L):
        wq, bq = lin(D, D)
        wk, bk = lin(D, D)
        wv, bv = lin(D, D)
        per["wqkv"].append(jnp.concatenate([wq, wk, wv], axis=1))
        per["bqkv"].append(jnp.concatenate([bq, bk, bv], axis=1))
        wo, bo = lin(D, D)
        per["wo"].append(wo); per["bo"].append(bo)
        w1, b1 = lin(D, mlp)
        per["w1"].append(w1); per["b1"].append(b1)
        w2, b2 = lin(mlp, D)
        per["w2"].append(w2); per["b2"].append(b2)
        per["ln1_g"].append(ones(D)); per["ln1_b"].append(zeros(D))
        per["ln2_g"].append(ones(D)); per["ln2_b"].append(zeros(D))
    for k, v in per.items():
        vit[k] = jnp.stack(v, axis=0)    # stacked over layers -> grid axis

    params = {"vit": vit}
    params["morph_w"], params["morph_b"] = lin(morphology_dim, hidden_dim)
    params["morph_ln_g"], params["morph_ln_b"] = ones(hidden_dim), zeros(hidden_dim)
    params["fus1_w"], params["fus1_b"] = lin(D + hidden_dim, hidden_dim)
    params["fus1_ln_g"], params["fus1_ln_b"] = ones(hidden_dim), zeros(hidden_dim)
    params["fus2_w"], params["fus2_b"] = lin(hidden_dim, hidden_dim // 2)
    params["fus2_ln_g"], params["fus2_ln_b"] = ones(hidden_dim // 2), zeros(hidden_dim // 2)
    params["out_w"], params["out_b"] = lin(hidden_dim // 2, output_dim)
    return params


# --------------------------------------------------------------------------
# Forward pass (2 pallas_calls total: ViT backbone + fused head)
# --------------------------------------------------------------------------

def he_biomarker_forward(params, images, morphology, cfg):
    img_features = vit_backbone(params["vit"], images, cfg)       # (B, D) CLS feats
    return fusion_head(params, img_features, morphology, cfg)     # (B, output_dim)


# --------------------------------------------------------------------------
# Main
# --------------------------------------------------------------------------

if __name__ == "__main__":
    # Small synthetic ViT config (same architecture as vit-base, reduced sizes).
    cfg = dict(image=32, patch=16, channels=3, hidden=64, heads=4, layers=2, mlp=128)
    morphology_dim, hidden_dim, output_dim = 16, 32, 4
    batch = 2

    params = make_params(cfg, morphology_dim, hidden_dim, output_dim, seed=0)

    key = jax.random.PRNGKey(0)
    k_img, k_morph = jax.random.split(key)
    images = jax.random.normal(
        k_img, (batch, cfg["channels"], cfg["image"], cfg["image"]), jnp.float32)  # NCHW
    morphology = jax.random.normal(k_morph, (batch, morphology_dim), jnp.float32)

    fwd = jax.jit(functools.partial(he_biomarker_forward, cfg=cfg))
    out = jax.block_until_ready(fwd(params, images, morphology))
    assert out.shape == (batch, output_dim), out.shape
    assert bool(jnp.all(jnp.isfinite(out)))
    print("KERNEL_OK")
</pallas_src>

<mosaic_0001>
module attributes {stable_mosaic.version = 11 : i64} {
  func.func @_vit_kernel(%arg0: i32, %arg1: memref<10x768xf32, #tpu.memory_space<vmem>>, %arg2: memref<768x64xf32, #tpu.memory_space<vmem>>, %arg3: memref<10x64xf32, #tpu.memory_space<vmem>>, %arg4: memref<10x10xf32, #tpu.memory_space<vmem>>, %arg5: memref<1x1x64xf32, #tpu.memory_space<vmem>>, %arg6: memref<1x1x64xf32, #tpu.memory_space<vmem>>, %arg7: memref<1x64x192xf32, #tpu.memory_space<vmem>>, %arg8: memref<1x1x192xf32, #tpu.memory_space<vmem>>, %arg9: memref<1x64x64xf32, #tpu.memory_space<vmem>>, %arg10: memref<1x1x64xf32, #tpu.memory_space<vmem>>, %arg11: memref<1x1x64xf32, #tpu.memory_space<vmem>>, %arg12: memref<1x1x64xf32, #tpu.memory_space<vmem>>, %arg13: memref<1x64x128xf32, #tpu.memory_space<vmem>>, %arg14: memref<1x1x128xf32, #tpu.memory_space<vmem>>, %arg15: memref<1x128x64xf32, #tpu.memory_space<vmem>>, %arg16: memref<1x1x64xf32, #tpu.memory_space<vmem>>, %arg17: memref<1x64xf32, #tpu.memory_space<vmem>>, %arg18: memref<1x64xf32, #tpu.memory_space<vmem>>, %arg19: memref<2x64xf32, #tpu.memory_space<vmem>>, %arg20: memref<10x64xf32, #tpu.memory_space<vmem>>) attributes {dimension_semantics = [#tpu.dimension_semantics<arbitrary>], iteration_bounds = array<i64: 2>, scalar_prefetch = 0 : i64, scratch_operands = 1 : i64, tpu.core_type = #tpu.core_type<tc>, window_params = [{pipeline_mode = #tpu.pipeline_mode<synchronous>, transform_indices = @transform_0, window_bounds = array<i64: 10, 768>}, {pipeline_mode = #tpu.pipeline_mode<synchronous>, transform_indices = @transform_1, window_bounds = array<i64: 768, 64>}, {pipeline_mode = #tpu.pipeline_mode<synchronous>, transform_indices = @transform_2, window_bounds = array<i64: 10, 64>}, {pipeline_mode = #tpu.pipeline_mode<synchronous>, transform_indices = @transform_3, window_bounds = array<i64: 10, 10>}, {transform_indices = @transform_4, window_bounds = array<i64: 1, 1, 64>}, {transform_indices = @transform_5, window_bounds = array<i64: 1, 1, 64>}, {transform_indices = @transform_6, window_bounds = array<i64: 1, 64, 192>}, {transform_indices = @transform_7, window_bounds = array<i64: 1, 1, 192>}, {transform_indices = @transform_8, window_bounds = array<i64: 1, 64, 64>}, {transform_indices = @transform_9, window_bounds = array<i64: 1, 1, 64>}, {transform_indices = @transform_10, window_bounds = array<i64: 1, 1, 64>}, {transform_indices = @transform_11, window_bounds = array<i64: 1, 1, 64>}, {transform_indices = @transform_12, window_bounds = array<i64: 1, 64, 128>}, {transform_indices = @transform_13, window_bounds = array<i64: 1, 1, 128>}, {transform_indices = @transform_14, window_bounds = array<i64: 1, 128, 64>}, {transform_indices = @transform_15, window_bounds = array<i64: 1, 1, 64>}, {pipeline_mode = #tpu.pipeline_mode<synchronous>, transform_indices = @transform_16, window_bounds = array<i64: 1, 64>}, {pipeline_mode = #tpu.pipeline_mode<synchronous>, transform_indices = @transform_17, window_bounds = array<i64: 1, 64>}, {pipeline_mode = #tpu.pipeline_mode<synchronous>, transform_indices = @transform_18, window_bounds = array<i64: 2, 64>}]} {
    %c0_i32 = arith.constant 0 : i32
    %0 = arith.cmpi eq, %arg0, %c0_i32 : i32
    %1 = arith.extui %0 : i1 to i32
    %c0_i32_0 = arith.constant 0 : i32
    %2 = arith.cmpi ne, %1, %c0_i32_0 : i32
    scf.if %2 {
      %c0_84 = arith.constant 0 : index
      %c0_85 = arith.constant 0 : index
      %188 = vector.load %arg1[%c0_84, %c0_85] : memref<10x768xf32, #tpu.memory_space<vmem>>, vector<10x768xf32>
      %c0_86 = arith.constant 0 : index
      %c0_87 = arith.constant 0 : index
      %189 = vector.load %arg2[%c0_86, %c0_87] : memref<768x64xf32, #tpu.memory_space<vmem>>, vector<768x64xf32>
      %cst_88 = arith.constant dense<0.000000e+00> : vector<10x64xf32>
      %190 = tpu.matmul %188, %189, %cst_88 {dimension_numbers = #tpu.dot_dimension_numbers<[1], [0], [0], [1], [0, 0, 1, 1], [], []>} : vector<10x768xf32>, vector<768x64xf32>, vector<10x64xf32> -> vector<10x64xf32>
      %c0_89 = arith.constant 0 : index
      %c0_90 = arith.constant 0 : index
      %191 = vector.load %arg3[%c0_89, %c0_90] : memref<10x64xf32, #tpu.memory_space<vmem>>, vector<10x64xf32>
      %192 = arith.addf %190, %191 : vector<10x64xf32>
      %c0_91 = arith.constant 0 : index
      %c0_92 = arith.constant 0 : index
      %193 = vector.load %arg20[%c0_91, %c0_92] : memref<10x64xf32, #tpu.memory_space<vmem>>, vector<10x64xf32>
      tpu.vector_store %arg20[%c0_91, %c0_92], %192 {strides = array<i32>} : memref<10x64xf32, #tpu.memory_space<vmem>>, vector<10x64xf32>,
    } else {
    }
    %c0 = arith.constant 0 : index
    %c0_1 = arith.constant 0 : index
    %3 = vector.load %arg20[%c0, %c0_1] : memref<10x64xf32, #tpu.memory_space<vmem>>, vector<10x64xf32>
    %c0_2 = arith.constant 0 : index
    %c0_3 = arith.constant 0 : index
    %c0_4 = arith.constant 0 : index
    %4 = vector.load %arg5[%c0_2, %c0_3, %c0_4] : memref<1x1x64xf32, #tpu.memory_space<vmem>>, vector<1x1x64xf32>
    %5 = vector.shape_cast %4 : vector<1x1x64xf32> to vector<1x64xf32>
    %c0_5 = arith.constant 0 : index
    %c0_6 = arith.constant 0 : index
    %c0_7 = arith.constant 0 : index
    %6 = vector.load %arg6[%c0_5, %c0_6, %c0_7] : memref<1x1x64xf32, #tpu.memory_space<vmem>>, vector<1x1x64xf32>
    %7 = vector.shape_cast %6 : vector<1x1x64xf32> to vector<1x64xf32>
    %cst = arith.constant dense<0.000000e+00> : vector<10xf32>
    %8 = vector.multi_reduction <add>, %3, %cst [1] : vector<10x64xf32> to vector<10xf32>
    %9 = vector.shape_cast %8 : vector<10xf32> to vector<10x1xf32>
    %cst_8 = arith.constant 6.400000e+01 : f32
    %10 = vector.broadcast %cst_8 : f32 to vector<10x1xf32>
    %11 = arith.divf %9, %10 : vector<10x1xf32>
    %12 = vector.broadcast %11 : vector<10x1xf32> to vector<10x64xf32>
    %13 = arith.subf %3, %12 : vector<10x64xf32>
    %14 = arith.mulf %13, %13 : vector<10x64xf32>
    %cst_9 = arith.constant dense<0.000000e+00> : vector<10xf32>
    %15 = vector.multi_reduction <add>, %14, %cst_9 [1] : vector<10x64xf32> to vector<10xf32>
    %16 = vector.shape_cast %15 : vector<10xf32> to vector<10x1xf32>
    %cst_10 = arith.constant 6.400000e+01 : f32
    %17 = vector.broadcast %cst_10 : f32 to vector<10x1xf32>
    %18 = arith.divf %16, %17 : vector<10x1xf32>
    %19 = vector.broadcast %11 : vector<10x1xf32> to vector<10x64xf32>
    %20 = arith.subf %3, %19 : vector<10x64xf32>
    %cst_11 = arith.constant 9.99999996E-13 : f32
    %21 = vector.broadcast %cst_11 : f32 to vector<10x1xf32>
    %22 = arith.addf %18, %21 : vector<10x1xf32>
    %23 = math.rsqrt %22 : vector<10x1xf32>
    %24 = vector.broadcast %23 : vector<10x1xf32> to vector<10x64xf32>
    %25 = arith.mulf %20, %24 : vector<10x64xf32>
    %26 = vector.broadcast %5 : vector<1x64xf32> to vector<10x64xf32>
    %27 = arith.mulf %25, %26 : vector<10x64xf32>
    %28 = vector.broadcast %7 : vector<1x64xf32> to vector<10x64xf32>
    %29 = arith.addf %27, %28 : vector<10x64xf32>
    %c0_12 = arith.constant 0 : index
    %c0_13 = arith.constant 0 : index
    %c0_14 = arith.constant 0 : index
    %30 = vector.load %arg7[%c0_12, %c0_13, %c0_14] : memref<1x64x192xf32, #tpu.memory_space<vmem>>, vector<1x64x192xf32>
    %31 = vector.shape_cast %30 : vector<1x64x192xf32> to vector<64x192xf32>
    %cst_15 = arith.constant dense<0.000000e+00> : vector<10x192xf32>
    %32 = tpu.matmul %29, %31, %cst_15 {dimension_numbers = #tpu.dot_dimension_numbers<[1], [0], [0], [1], [0, 0, 1, 1], [], []>} : vector<10x64xf32>, vector<64x192xf32>, vector<10x192xf32> -> vector<10x192xf32>
    %c0_16 = arith.constant 0 : index
    %c0_17 = arith.constant 0 : index
    %c0_18 = arith.constant 0 : index
    %33 = vector.load %arg8[%c0_16, %c0_17, %c0_18] : memref<1x1x192xf32, #tpu.memory_space<vmem>>, vector<1x1x192xf32>
    %34 = vector.shape_cast %33 : vector<1x1x192xf32> to vector<1x192xf32>
    %35 = vector.broadcast %34 : vector<1x192xf32> to vector<10x192xf32>
    %36 = arith.addf %32, %35 : vector<10x192xf32>
    %c0_19 = arith.constant 0 : index
    %c0_20 = arith.constant 0 : index
    %c0_21 = arith.constant 0 : index
    %37 = vector.load %arg9[%c0_19, %c0_20, %c0_21] : memref<1x64x64xf32, #tpu.memory_space<vmem>>, vector<1x64x64xf32>
    %38 = vector.shape_cast %37 : vector<1x64x64xf32> to vector<64x64xf32>
    %c0_22 = arith.constant 0 : index
    %c0_23 = arith.constant 0 : index
    %39 = vector.load %arg4[%c0_22, %c0_23] : memref<10x10xf32, #tpu.memory_space<vmem>>, vector<10x10xf32>
    %cst_24 = arith.constant 0.000000e+00 : f32
    %40 = vector.broadcast %cst_24 : f32 to vector<10x64xf32>
    %41 = vector.extract_strided_slice %36 {offsets = [0, 0], sizes = [10, 16], strides = [1, 1]} : vector<10x192xf32> to vector<10x16xf32>
    %42 = vector.extract_strided_slice %36 {offsets = [0, 64], sizes = [10, 16], strides = [1, 1]} : vector<10x192xf32> to vector<10x16xf32>
    %43 = vector.extract_strided_slice %36 {offsets = [0, 128], sizes = [10, 16], strides = [1, 1]} : vector<10x192xf32> to vector<10x16xf32>
    %cst_25 = arith.constant dense<0.000000e+00> : vector<10x10xf32>
    %44 = tpu.matmul %41, %42, %cst_25 {dimension_numbers = #tpu.dot_dimension_numbers<[1], [1], [0], [0], [0, 0, 1, 0], [], []>} : vector<10x16xf32>, vector<10x16xf32>, vector<10x10xf32> -> vector<10x10xf32>
    %cst_26 = arith.constant 2.500000e-01 : f32
    %45 = vector.broadcast %cst_26 : f32 to vector<10x10xf32>
    %46 = arith.mulf %44, %45 : vector<10x10xf32>
    %47 = arith.addf %46, %39 : vector<10x10xf32>
    %cst_27 = arith.constant dense<0xFF800000> : vector<10xf32>
    %48 = vector.multi_reduction <maximumf>, %47, %cst_27 [1] : vector<10x10xf32> to vector<10xf32>
    %49 = vector.shape_cast %48 : vector<10xf32> to vector<10x1xf32>
    %50 = vector.broadcast %49 : vector<10x1xf32> to vector<10x10xf32>
    %51 = arith.subf %47, %50 : vector<10x10xf32>
    %52 = math.exp %51 : vector<10x10xf32>
    %cst_28 = arith.constant dense<0.000000e+00> : vector<10xf32>
    %53 = vector.multi_reduction <add>, %52, %cst_28 [1] : vector<10x10xf32> to vector<10xf32>
    %54 = vector.shape_cast %53 : vector<10xf32> to vector<10x1xf32>
    %55 = tpu.reciprocal %54 {approx = true} : vector<10x1xf32> -> vector<10x1xf32>
    %56 = vector.broadcast %55 : vector<10x1xf32> to vector<10x10xf32>
    %57 = arith.mulf %52, %56 : vector<10x10xf32>
    %cst_29 = arith.constant dense<0.000000e+00> : vector<10x16xf32>
    %58 = tpu.matmul %57, %43, %cst_29 {dimension_numbers = #tpu.dot_dimension_numbers<[1], [0], [0], [1], [0, 0, 1, 1], [], []>} : vector<10x10xf32>, vector<10x16xf32>, vector<10x16xf32> -> vector<10x16xf32>
    %59 = vector.extract_strided_slice %38 {offsets = [0, 0], sizes = [16, 64], strides = [1, 1]} : vector<64x64xf32> to vector<16x64xf32>
    %cst_30 = arith.constant dense<0.000000e+00> : vector<10x64xf32>
    %60 = tpu.matmul %58, %59, %cst_30 {dimension_numbers = #tpu.dot_dimension_numbers<[1], [0], [0], [1], [0, 0, 1, 1], [], []>} : vector<10x16xf32>, vector<16x64xf32>, vector<10x64xf32> -> vector<10x64xf32>
    %61 = arith.addf %40, %60 : vector<10x64xf32>
    %62 = vector.extract_strided_slice %36 {offsets = [0, 16], sizes = [10, 16], strides = [1, 1]} : vector<10x192xf32> to vector<10x16xf32>
    %63 = vector.extract_strided_slice %36 {offsets = [0, 80], sizes = [10, 16], strides = [1, 1]} : vector<10x192xf32> to vector<10x16xf32>
    %64 = vector.extract_strided_slice %36 {offsets = [0, 144], sizes = [10, 16], strides = [1, 1]} : vector<10x192xf32> to vector<10x16xf32>
    %cst_31 = arith.constant dense<0.000000e+00> : vector<10x10xf32>
    %65 = tpu.matmul %62, %63, %cst_31 {dimension_numbers = #tpu.dot_dimension_numbers<[1], [1], [0], [0], [0, 0, 1, 0], [], []>} : vector<10x16xf32>, vector<10x16xf32>, vector<10x10xf32> -> vector<10x10xf32>
    %cst_32 = arith.constant 2.500000e-01 : f32
    %66 = vector.broadcast %cst_32 : f32 to vector<10x10xf32>
    %67 = arith.mulf %65, %66 : vector<10x10xf32>
    %68 = arith.addf %67, %39 : vector<10x10xf32>
    %cst_33 = arith.constant dense<0xFF800000> : vector<10xf32>
    %69 = vector.multi_reduction <maximumf>, %68, %cst_33 [1] : vector<10x10xf32> to vector<10xf32>
    %70 = vector.shape_cast %69 : vector<10xf32> to vector<10x1xf32>
    %71 = vector.broadcast %70 : vector<10x1xf32> to vector<10x10xf32>
    %72 = arith.subf %68, %71 : vector<10x10xf32>
    %73 = math.exp %72 : vector<10x10xf32>
    %cst_34 = arith.constant dense<0.000000e+00> : vector<10xf32>
    %74 = vector.multi_reduction <add>, %73, %cst_34 [1] : vector<10x10xf32> to vector<10xf32>
    %75 = vector.shape_cast %74 : vector<10xf32> to vector<10x1xf32>
    %76 = tpu.reciprocal %75 {approx = true} : vector<10x1xf32> -> vector<10x1xf32>
    %77 = vector.broadcast %76 : vector<10x1xf32> to vector<10x10xf32>
    %78 = arith.mulf %73, %77 : vector<10x10xf32>
    %cst_35 = arith.constant dense<0.000000e+00> : vector<10x16xf32>
    %79 = tpu.matmul %78, %64, %cst_35 {dimension_numbers = #tpu.dot_dimension_numbers<[1], [0], [0], [1], [0, 0, 1, 1], [], []>} : vector<10x10xf32>, vector<10x16xf32>, vector<10x16xf32> -> vector<10x16xf32>
    %80 = vector.extract_strided_slice %38 {offsets = [16, 0], sizes = [16, 64], strides = [1, 1]} : vector<64x64xf32> to vector<16x64xf32>
    %cst_36 = arith.constant dense<0.000000e+00> : vector<10x64xf32>
    %81 = tpu.matmul %79, %80, %cst_36 {dimension_numbers = #tpu.dot_dimension_numbers<[1], [0], [0], [1], [0, 0, 1, 1], [], []>} : vector<10x16xf32>, vector<16x64xf32>, vector<10x64xf32> -> vector<10x64xf32>
    %82 = arith.addf %61, %81 : vector<10x64xf32>
    %83 = vector.extract_strided_slice %36 {offsets = [0, 32], sizes = [10, 16], strides = [1, 1]} : vector<10x192xf32> to vector<10x16xf32>
    %84 = vector.extract_strided_slice %36 {offsets = [0, 96], sizes = [10, 16], strides = [1, 1]} : vector<10x192xf32> to vector<10x16xf32>
    %85 = vector.extract_strided_slice %36 {offsets = [0, 160], sizes = [10, 16], strides = [1, 1]} : vector<10x192xf32> to vector<10x16xf32>
    %cst_37 = arith.constant dense<0.000000e+00> : vector<10x10xf32>
    %86 = tpu.matmul %83, %84, %cst_37 {dimension_numbers = #tpu.dot_dimension_numbers<[1], [1], [0], [0], [0, 0, 1, 0], [], []>} : vector<10x16xf32>, vector<10x16xf32>, vector<10x10xf32> -> vector<10x10xf32>
    %cst_38 = arith.constant 2.500000e-01 : f32
    %87 = vector.broadcast %cst_38 : f32 to vector<10x10xf32>
    %88 = arith.mulf %86, %87 : vector<10x10xf32>
    %89 = arith.addf %88, %39 : vector<10x10xf32>
    %cst_39 = arith.constant dense<0xFF800000> : vector<10xf32>
    %90 = vector.multi_reduction <maximumf>, %89, %cst_39 [1] : vector<10x10xf32> to vector<10xf32>
    %91 = vector.shape_cast %90 : vector<10xf32> to vector<10x1xf32>
    %92 = vector.broadcast %91 : vector<10x1xf32> to vector<10x10xf32>
    %93 = arith.subf %89, %92 : vector<10x10xf32>
    %94 = math.exp %93 : vector<10x10xf32>
    %cst_40 = arith.constant dense<0.000000e+00> : vector<10xf32>
    %95 = vector.multi_reduction <add>, %94, %cst_40 [1] : vector<10x10xf32> to vector<10xf32>
    %96 = vector.shape_cast %95 : vector<10xf32> to vector<10x1xf32>
    %97 = tpu.reciprocal %96 {approx = true} : vector<10x1xf32> -> vector<10x1xf32>
    %98 = vector.broadcast %97 : vector<10x1xf32> to vector<10x10xf32>
    %99 = arith.mulf %94, %98 : vector<10x10xf32>
    %cst_41 = arith.constant dense<0.000000e+00> : vector<10x16xf32>
    %100 = tpu.matmul %99, %85, %cst_41 {dimension_numbers = #tpu.dot_dimension_numbers<[1], [0], [0], [1], [0, 0, 1, 1], [], []>} : vector<10x10xf32>, vector<10x16xf32>, vector<10x16xf32> -> vector<10x16xf32>
    %101 = vector.extract_strided_slice %38 {offsets = [32, 0], sizes = [16, 64], strides = [1, 1]} : vector<64x64xf32> to vector<16x64xf32>
    %cst_42 = arith.constant dense<0.000000e+00> : vector<10x64xf32>
    %102 = tpu.matmul %100, %101, %cst_42 {dimension_numbers = #tpu.dot_dimension_numbers<[1], [0], [0], [1], [0, 0, 1, 1], [], []>} : vector<10x16xf32>, vector<16x64xf32>, vector<10x64xf32> -> vector<10x64xf32>
    %103 = arith.addf %82, %102 : vector<10x64xf32>
    %104 = vector.extract_strided_slice %36 {offsets = [0, 48], sizes = [10, 16], strides = [1, 1]} : vector<10x192xf32> to vector<10x16xf32>
    %105 = vector.extract_strided_slice %36 {offsets = [0, 112], sizes = [10, 16], strides = [1, 1]} : vector<10x192xf32> to vector<10x16xf32>
    %106 = vector.extract_strided_slice %36 {offsets = [0, 176], sizes = [10, 16], strides = [1, 1]} : vector<10x192xf32> to vector<10x16xf32>
    %cst_43 = arith.constant dense<0.000000e+00> : vector<10x10xf32>
    %107 = tpu.matmul %104, %105, %cst_43 {dimension_numbers = #tpu.dot_dimension_numbers<[1], [1], [0], [0], [0, 0, 1, 0], [], []>} : vector<10x16xf32>, vector<10x16xf32>, vector<10x10xf32> -> vector<10x10xf32>
    %cst_44 = arith.constant 2.500000e-01 : f32
    %108 = vector.broadcast %cst_44 : f32 to vector<10x10xf32>
    %109 = arith.mulf %107, %108 : vector<10x10xf32>
    %110 = arith.addf %109, %39 : vector<10x10xf32>
    %cst_45 = arith.constant dense<0xFF800000> : vector<10xf32>
    %111 = vector.multi_reduction <maximumf>, %110, %cst_45 [1] : vector<10x10xf32> to vector<10xf32>
    %112 = vector.shape_cast %111 : vector<10xf32> to vector<10x1xf32>
    %113 = vector.broadcast %112 : vector<10x1xf32> to vector<10x10xf32>
    %114 = arith.subf %110, %113 : vector<10x10xf32>
    %115 = math.exp %114 : vector<10x10xf32>
    %cst_46 = arith.constant dense<0.000000e+00> : vector<10xf32>
    %116 = vector.multi_reduction <add>, %115, %cst_46 [1] : vector<10x10xf32> to vector<10xf32>
    %117 = vector.shape_cast %116 : vector<10xf32> to vector<10x1xf32>
    %118 = tpu.reciprocal %117 {approx = true} : vector<10x1xf32> -> vector<10x1xf32>
    %119 = vector.broadcast %118 : vector<10x1xf32> to vector<10x10xf32>
    %120 = arith.mulf %115, %119 : vector<10x10xf32>
    %cst_47 = arith.constant dense<0.000000e+00> : vector<10x16xf32>
    %121 = tpu.matmul %120, %106, %cst_47 {dimension_numbers = #tpu.dot_dimension_numbers<[1], [0], [0], [1], [0, 0, 1, 1], [], []>} : vector<10x10xf32>, vector<10x16xf32>, vector<10x16xf32> -> vector<10x16xf32>
    %122 = vector.extract_strided_slice %38 {offsets = [48, 0], sizes = [16, 64], strides = [1, 1]} : vector<64x64xf32> to vector<16x64xf32>
    %cst_48 = arith.constant dense<0.000000e+00> : vector<10x64xf32>
    %123 = tpu.matmul %121, %122, %cst_48 {dimension_numbers = #tpu.dot_dimension_numbers<[1], [0], [0], [1], [0, 0, 1, 1], [], []>} : vector<10x16xf32>, vector<16x64xf32>, vector<10x64xf32> -> vector<10x64xf32>
    %124 = arith.addf %103, %123 : vector<10x64xf32>
    %125 = arith.addf %3, %124 : vector<10x64xf32>
    %c0_49 = arith.constant 0 : index
    %c0_50 = arith.constant 0 : index
    %c0_51 = arith.constant 0 : index
    %126 = vector.load %arg10[%c0_49, %c0_50, %c0_51] : memref<1x1x64xf32, #tpu.memory_space<vmem>>, vector<1x1x64xf32>
    %127 = vector.shape_cast %126 : vector<1x1x64xf32> to vector<1x64xf32>
    %128 = vector.broadcast %127 : vector<1x64xf32> to vector<10x64xf32>
    %129 = arith.addf %125, %128 : vector<10x64xf32>
    %c0_52 = arith.constant 0 : index
    %c0_53 = arith.constant 0 : index
    %c0_54 = arith.constant 0 : index
    %130 = vector.load %arg11[%c0_52, %c0_53, %c0_54] : memref<1x1x64xf32, #tpu.memory_space<vmem>>, vector<1x1x64xf32>
    %131 = vector.shape_cast %130 : vector<1x1x64xf32> to vector<1x64xf32>
    %c0_55 = arith.constant 0 : index
    %c0_56 = arith.constant 0 : index
    %c0_57 = arith.constant 0 : index
    %132 = vector.load %arg12[%c0_55, %c0_56, %c0_57] : memref<1x1x64xf32, #tpu.memory_space<vmem>>, vector<1x1x64xf32>
    %133 = vector.shape_cast %132 : vector<1x1x64xf32> to vector<1x64xf32>
    %cst_58 = arith.constant dense<0.000000e+00> : vector<10xf32>
    %134 = vector.multi_reduction <add>, %129, %cst_58 [1] : vector<10x64xf32> to vector<10xf32>
    %135 = vector.shape_cast %134 : vector<10xf32> to vector<10x1xf32>
    %cst_59 = arith.constant 6.400000e+01 : f32
    %136 = vector.broadcast %cst_59 : f32 to vector<10x1xf32>
    %137 = arith.divf %135, %136 : vector<10x1xf32>
    %138 = vector.broadcast %137 : vector<10x1xf32> to vector<10x64xf32>
    %139 = arith.subf %129, %138 : vector<10x64xf32>
    %140 = arith.mulf %139, %139 : vector<10x64xf32>
    %cst_60 = arith.constant dense<0.000000e+00> : vector<10xf32>
    %141 = vector.multi_reduction <add>, %140, %cst_60 [1] : vector<10x64xf32> to vector<10xf32>
    %142 = vector.shape_cast %141 : vector<10xf32> to vector<10x1xf32>
    %cst_61 = arith.constant 6.400000e+01 : f32
    %143 = vector.broadcast %cst_61 : f32 to vector<10x1xf32>
    %144 = arith.divf %142, %143 : vector<10x1xf32>
    %145 = vector.broadcast %137 : vector<10x1xf32> to vector<10x64xf32>
    %146 = arith.subf %129, %145 : vector<10x64xf32>
    %cst_62 = arith.constant 9.99999996E-13 : f32
    %147 = vector.broadcast %cst_62 : f32 to vector<10x1xf32>
    %148 = arith.addf %144, %147 : vector<10x1xf32>
    %149 = math.rsqrt %148 : vector<10x1xf32>
    %150 = vector.broadcast %149 : vector<10x1xf32> to vector<10x64xf32>
    %151 = arith.mulf %146, %150 : vector<10x64xf32>
    %152 = vector.broadcast %131 : vector<1x64xf32> to vector<10x64xf32>
    %153 = arith.mulf %151, %152 : vector<10x64xf32>
    %154 = vector.broadcast %133 : vector<1x64xf32> to vector<10x64xf32>
    %155 = arith.addf %153, %154 : vector<10x64xf32>
    %c0_63 = arith.constant 0 : index
    %c0_64 = arith.constant 0 : index
    %c0_65 = arith.constant 0 : index
    %156 = vector.load %arg13[%c0_63, %c0_64, %c0_65] : memref<1x64x128xf32, #tpu.memory_space<vmem>>, vector<1x64x128xf32>
    %157 = vector.shape_cast %156 : vector<1x64x128xf32> to vector<64x128xf32>
    %cst_66 = arith.constant dense<0.000000e+00> : vector<10x128xf32>
    %158 = tpu.matmul %155, %157, %cst_66 {dimension_numbers = #tpu.dot_dimension_numbers<[1], [0], [0], [1], [0, 0, 1, 1], [], []>} : vector<10x64xf32>, vector<64x128xf32>, vector<10x128xf32> -> vector<10x128xf32>
    %c0_67 = arith.constant 0 : index
    %c0_68 = arith.constant 0 : index
    %c0_69 = arith.constant 0 : index
    %159 = vector.load %arg14[%c0_67, %c0_68, %c0_69] : memref<1x1x128xf32, #tpu.memory_space<vmem>>, vector<1x1x128xf32>
    %160 = vector.shape_cast %159 : vector<1x1x128xf32> to vector<1x128xf32>
    %161 = vector.broadcast %160 : vector<1x128xf32> to vector<10x128xf32>
    %162 = arith.addf %158, %161 : vector<10x128xf32>
    %163 = arith.mulf %162, %162 : vector<10x128xf32>
    %164 = arith.mulf %162, %163 : vector<10x128xf32>
    %cst_70 = arith.constant 4.471500e-02 : f32
    %165 = vector.broadcast %cst_70 : f32 to vector<10x128xf32>
    %166 = arith.mulf %165, %164 : vector<10x128xf32>
    %167 = arith.addf %162, %166 : vector<10x128xf32>
    %cst_71 = arith.constant 0.797884583 : f32
    %168 = vector.broadcast %cst_71 : f32 to vector<10x128xf32>
    %169 = arith.mulf %168, %167 : vector<10x128xf32>
    %170 = math.tanh %169 : vector<10x128xf32>
    %cst_72 = arith.constant 1.000000e+00 : f32
    %171 = vector.broadcast %cst_72 : f32 to vector<10x128xf32>
    %172 = arith.addf %171, %170 : vector<10x128xf32>
    %cst_73 = arith.constant 5.000000e-01 : f32
    %173 = vector.broadcast %cst_73 : f32 to vector<10x128xf32>
    %174 = arith.mulf %173, %172 : vector<10x128xf32>
    %175 = arith.mulf %162, %174 : vector<10x128xf32>
    %c0_74 = arith.constant 0 : index
    %c0_75 = arith.constant 0 : index
    %c0_76 = arith.constant 0 : index
    %176 = vector.load %arg15[%c0_74, %c0_75, %c0_76] : memref<1x128x64xf32, #tpu.memory_space<vmem>>, vector<1x128x64xf32>
    %177 = vector.shape_cast %176 : vector<1x128x64xf32> to vector<128x64xf32>
    %cst_77 = arith.constant dense<0.000000e+00> : vector<10x64xf32>
    %178 = tpu.matmul %175, %177, %cst_77 {dimension_numbers = #tpu.dot_dimension_numbers<[1], [0], [0], [1], [0, 0, 1, 1], [], []>} : vector<10x128xf32>, vector<128x64xf32>, vector<10x64xf32> -> vector<10x64xf32>
    %c0_78 = arith.constant 0 : index
    %c0_79 = arith.constant 0 : index
    %c0_80 = arith.constant 0 : index
    %179 = vector.load %arg16[%c0_78, %c0_79, %c0_80] : memref<1x1x64xf32, #tpu.memory_space<vmem>>, vector<1x1x64xf32>
    %180 = vector.shape_cast %179 : vector<1x1x64xf32> to vector<1x64xf32>
    %181 = vector.broadcast %180 : vector<1x64xf32> to vector<10x64xf32>
    %182 = arith.addf %178, %181 : vector<10x64xf32>
    %183 = arith.addf %129, %182 : vector<10x64xf32>
    %c0_81 = arith.constant 0 : index
    %c0_82 = arith.constant 0 : index
    %184 = vector.load %arg20[%c0_81, %c0_82] : memref<10x64xf32, #tpu.memory_space<vmem>>, vector<10x64xf32>
    tpu.vector_store %arg20[%c0_81, %c0_82], %183 {strides = array<i32>} : memref<10x64xf32, #tpu.memory_space<vmem>>, vector<10x64xf32>,
    %c1_i32 = arith.constant 1 : i32
    %185 = arith.cmpi eq, %arg0, %c1_i32 : i32
    %186 = arith.extui %185 : i1 to i32
    %c0_i32_83 = arith.constant 0 : i32
    %187 = arith.cmpi ne, %186, %c0_i32_83 : i32
    scf.if %187 {
      %188 = vector.extract_strided_slice %183 {offsets = [0, 0], sizes = [1, 64], strides = [1, 1]} : vector<10x64xf32> to vector<1x64xf32>
      %c0_84 = arith.constant 0 : index
      %c0_85 = arith.constant 0 : index
      %189 = vector.load %arg17[%c0_84, %c0_85] : memref<1x64xf32, #tpu.memory_space<vmem>>, vector<1x64xf32>
      %c0_86 = arith.constant 0 : index
      %c0_87 = arith.constant 0 : index
      %190 = vector.load %arg18[%c0_86, %c0_87] : memref<1x64xf32, #tpu.memory_space<vmem>>, vector<1x64xf32>
      %cst_88 = arith.constant dense<0.000000e+00> : vector<1xf32>
      %191 = vector.multi_reduction <add>, %188, %cst_88 [1] : vector<1x64xf32> to vector<1xf32>
      %192 = vector.shape_cast %191 : vector<1xf32> to vector<1x1xf32>
      %cst_89 = arith.constant 6.400000e+01 : f32
      %193 = vector.broadcast %cst_89 : f32 to vector<1x1xf32>
      %194 = arith.divf %192, %193 : vector<1x1xf32>
      %195 = vector.broadcast %194 : vector<1x1xf32> to vector<1x64xf32>
      %196 = arith.subf %188, %195 : vector<1x64xf32>
      %197 = arith.mulf %196, %196 : vector<1x64xf32>
      %cst_90 = arith.constant dense<0.000000e+00> : vector<1xf32>
      %198 = vector.multi_reduction <add>, %197, %cst_90 [1] : vector<1x64xf32> to vector<1xf32>
      %199 = vector.shape_cast %198 : vector<1xf32> to vector<1x1xf32>
      %cst_91 = arith.constant 6.400000e+01 : f32
      %200 = vector.broadcast %cst_91 : f32 to vector<1x1xf32>
      %201 = arith.divf %199, %200 : vector<1x1xf32>
      %202 = vector.broadcast %194 : vector<1x1xf32> to vector<1x64xf32>
      %203 = arith.subf %188, %202 : vector<1x64xf32>
      %cst_92 = arith.constant 9.99999996E-13 : f32
      %204 = vector.broadcast %cst_92 : f32 to vector<1x1xf32>
      %205 = arith.addf %201, %204 : vector<1x1xf32>
      %206 = math.rsqrt %205 : vector<1x1xf32>
      %207 = vector.broadcast %206 : vector<1x1xf32> to vector<1x64xf32>
      %208 = arith.mulf %203, %207 : vector<1x64xf32>
      %209 = arith.mulf %208, %189 : vector<1x64xf32>
      %210 = arith.addf %209, %190 : vector<1x64xf32>
      %c0_93 = arith.constant 0 : index
      %c0_94 = arith.constant 0 : index
      %211 = vector.load %arg19[%c0_93, %c0_94] : memref<2x64xf32, #tpu.memory_space<vmem>>, vector<1x64xf32>
      tpu.vector_store %arg19[%c0_93, %c0_94], %210 {strides = array<i32>} : memref<2x64xf32, #tpu.memory_space<vmem>>, vector<1x64xf32>,
      %212 = vector.extract_strided_slice %183 {offsets = [5, 0], sizes = [1, 64], strides = [1, 1]} : vector<10x64xf32> to vector<1x64xf32>
      %c0_95 = arith.constant 0 : index
      %c0_96 = arith.constant 0 : index
      %213 = vector.load %arg17[%c0_95, %c0_96] : memref<1x64xf32, #tpu.memory_space<vmem>>, vector<1x64xf32>
      %c0_97 = arith.constant 0 : index
      %c0_98 = arith.constant 0 : index
      %214 = vector.load %arg18[%c0_97, %c0_98] : memref<1x64xf32, #tpu.memory_space<vmem>>, vector<1x64xf32>
      %cst_99 = arith.constant dense<0.000000e+00> : vector<1xf32>
      %215 = vector.multi_reduction <add>, %212, %cst_99 [1] : vector<1x64xf32> to vector<1xf32>
      %216 = vector.shape_cast %215 : vector<1xf32> to vector<1x1xf32>
      %cst_100 = arith.constant 6.400000e+01 : f32
      %217 = vector.broadcast %cst_100 : f32 to vector<1x1xf32>
      %218 = arith.divf %216, %217 : vector<1x1xf32>
      %219 = vector.broadcast %218 : vector<1x1xf32> to vector<1x64xf32>
      %220 = arith.subf %212, %219 : vector<1x64xf32>
      %221 = arith.mulf %220, %220 : vector<1x64xf32>
      %cst_101 = arith.constant dense<0.000000e+00> : vector<1xf32>
      %222 = vector.multi_reduction <add>, %221, %cst_101 [1] : vector<1x64xf32> to vector<1xf32>
      %223 = vector.shape_cast %222 : vector<1xf32> to vector<1x1xf32>
      %cst_102 = arith.constant 6.400000e+01 : f32
      %224 = vector.broadcast %cst_102 : f32 to vector<1x1xf32>
      %225 = arith.divf %223, %224 : vector<1x1xf32>
      %226 = vector.broadcast %218 : vector<1x1xf32> to vector<1x64xf32>
      %227 = arith.subf %212, %226 : vector<1x64xf32>
      %cst_103 = arith.constant 9.99999996E-13 : f32
      %228 = vector.broadcast %cst_103 : f32 to vector<1x1xf32>
      %229 = arith.addf %225, %228 : vector<1x1xf32>
      %230 = math.rsqrt %229 : vector<1x1xf32>
      %231 = vector.broadcast %230 : vector<1x1xf32> to vector<1x64xf32>
      %232 = arith.mulf %227, %231 : vector<1x64xf32>
      %233 = arith.mulf %232, %213 : vector<1x64xf32>
      %234 = arith.addf %233, %214 : vector<1x64xf32>
      %c1 = arith.constant 1 : index
      %c0_104 = arith.constant 0 : index
      %235 = vector.load %arg19[%c1, %c0_104] : memref<2x64xf32, #tpu.memory_space<vmem>>, vector<1x64xf32>
      tpu.vector_store %arg19[%c1, %c0_104], %234 {strides = array<i32>} : memref<2x64xf32, #tpu.memory_space<vmem>>, vector<1x64xf32>,
    } else {
    }
    return
  }
  func.func @transform_0(%arg0: i32) -> (i32, i32) {
    %c0_i32 = arith.constant 0 : i32
    %c0_i32_0 = arith.constant 0 : i32
    %c0_i32_1 = arith.constant 0 : i32
    return %c0_i32, %c0_i32_0 : i32, i32
  }
  func.func @transform_1(%arg0: i32) -> (i32, i32) {
    %c0_i32 = arith.constant 0 : i32
    %c0_i32_0 = arith.constant 0 : i32
    %c0_i32_1 = arith.constant 0 : i32
    return %c0_i32, %c0_i32_0 : i32, i32
  }
  func.func @transform_2(%arg0: i32) -> (i32, i32) {
    %c0_i32 = arith.constant 0 : i32
    %c0_i32_0 = arith.constant 0 : i32
    %c0_i32_1 = arith.constant 0 : i32
    return %c0_i32, %c0_i32_0 : i32, i32
  }
  func.func @transform_3(%arg0: i32) -> (i32, i32) {
    %c0_i32 = arith.constant 0 : i32
    %c0_i32_0 = arith.constant 0 : i32
    %c0_i32_1 = arith.constant 0 : i32
    return %c0_i32, %c0_i32_0 : i32, i32
  }
  func.func @transform_4(%arg0: i32) -> (i32, i32, i32) {
    %c0_i32 = arith.constant 0 : i32
    %c0_i32_0 = arith.constant 0 : i32
    %c0_i32_1 = arith.constant 0 : i32
    return %arg0, %c0_i32, %c0_i32_0 : i32, i32, i32
  }
  func.func @transform_5(%arg0: i32) -> (i32, i32, i32) {
    %c0_i32 = arith.constant 0 : i32
    %c0_i32_0 = arith.constant 0 : i32
    %c0_i32_1 = arith.constant 0 : i32
    return %arg0, %c0_i32, %c0_i32_0 : i32, i32, i32
  }
  func.func @transform_6(%arg0: i32) -> (i32, i32, i32) {
    %c0_i32 = arith.constant 0 : i32
    %c0_i32_0 = arith.constant 0 : i32
    %c0_i32_1 = arith.constant 0 : i32
    return %arg0, %c0_i32, %c0_i32_0 : i32, i32, i32
  }
  func.func @transform_7(%arg0: i32) -> (i32, i32, i32) {
    %c0_i32 = arith.constant 0 : i32
    %c0_i32_0 = arith.constant 0 : i32
    %c0_i32_1 = arith.constant 0 : i32
    return %arg0, %c0_i32, %c0_i32_0 : i32, i32, i32
  }
  func.func @transform_8(%arg0: i32) -> (i32, i32, i32) {
    %c0_i32 = arith.constant 0 : i32
    %c0_i32_0 = arith.constant 0 : i32
    %c0_i32_1 = arith.constant 0 : i32
    return %arg0, %c0_i32, %c0_i32_0 : i32, i32, i32
  }
  func.func @transform_9(%arg0: i32) -> (i32, i32, i32) {
    %c0_i32 = arith.constant 0 : i32
    %c0_i32_0 = arith.constant 0 : i32
    %c0_i32_1 = arith.constant 0 : i32
    return %arg0, %c0_i32, %c0_i32_0 : i32, i32, i32
  }
  func.func @transform_10(%arg0: i32) -> (i32, i32, i32) {
    %c0_i32 = arith.constant 0 : i32
    %c0_i32_0 = arith.constant 0 : i32
    %c0_i32_1 = arith.constant 0 : i32
    return %arg0, %c0_i32, %c0_i32_0 : i32, i32, i32
  }
  func.func @transform_11(%arg0: i32) -> (i32, i32, i32) {
    %c0_i32 = arith.constant 0 : i32
    %c0_i32_0 = arith.constant 0 : i32
    %c0_i32_1 = arith.constant 0 : i32
    return %arg0, %c0_i32, %c0_i32_0 : i32, i32, i32
  }
  func.func @transform_12(%arg0: i32) -> (i32, i32, i32) {
    %c0_i32 = arith.constant 0 : i32
    %c0_i32_0 = arith.constant 0 : i32
    %c0_i32_1 = arith.constant 0 : i32
    return %arg0, %c0_i32, %c0_i32_0 : i32, i32, i32
  }
  func.func @transform_13(%arg0: i32) -> (i32, i32, i32) {
    %c0_i32 = arith.constant 0 : i32
    %c0_i32_0 = arith.constant 0 : i32
    %c0_i32_1 = arith.constant 0 : i32
    return %arg0, %c0_i32, %c0_i32_0 : i32, i32, i32
  }
  func.func @transform_14(%arg0: i32) -> (i32, i32, i32) {
    %c0_i32 = arith.constant 0 : i32
    %c0_i32_0 = arith.constant 0 : i32
    %c0_i32_1 = arith.constant 0 : i32
    return %arg0, %c0_i32, %c0_i32_0 : i32, i32, i32
  }
  func.func @transform_15(%arg0: i32) -> (i32, i32, i32) {
    %c0_i32 = arith.constant 0 : i32
    %c0_i32_0 = arith.constant 0 : i32
    %c0_i32_1 = arith.constant 0 : i32
    return %arg0, %c0_i32, %c0_i32_0 : i32, i32, i32
  }
  func.func @transform_16(%arg0: i32) -> (i32, i32) {
    %c0_i32 = arith.constant 0 : i32
    %c0_i32_0 = arith.constant 0 : i32
    %c0_i32_1 = arith.constant 0 : i32
    return %c0_i32, %c0_i32_0 : i32, i32
  }
  func.func @transform_17(%arg0: i32) -> (i32, i32) {
    %c0_i32 = arith.constant 0 : i32
    %c0_i32_0 = arith.constant 0 : i32
    %c0_i32_1 = arith.constant 0 : i32
    return %c0_i32, %c0_i32_0 : i32, i32
  }
  func.func @transform_18(%arg0: i32) -> (i32, i32) {
    %c0_i32 = arith.constant 0 : i32
    %c0_i32_0 = arith.constant 0 : i32
    %c0_i32_1 = arith.constant 0 : i32
    return %c0_i32, %c0_i32_0 : i32, i32
  }
}

module attributes {stable_mosaic.version = 11 : i64} {
  func.func @_head_kernel(%arg0: i32, %arg1: memref<2x64xf32, #tpu.memory_space<vmem>>, %arg2: memref<2x16xf32, #tpu.memory_space<vmem>>, %arg3: memref<16x32xf32, #tpu.memory_space<vmem>>, %arg4: memref<1x32xf32, #tpu.memory_space<vmem>>, %arg5: memref<1x32xf32, #tpu.memory_space<vmem>>, %arg6: memref<1x32xf32, #tpu.memory_space<vmem>>, %arg7: memref<64x32xf32, #tpu.memory_space<vmem>>, %arg8: memref<32x32xf32, #tpu.memory_space<vmem>>, %arg9: memref<1x32xf32, #tpu.memory_space<vmem>>, %arg10: memref<1x32xf32, #tpu.memory_space<vmem>>, %arg11: memref<1x32xf32, #tpu.memory_space<vmem>>, %arg12: memref<32x16xf32, #tpu.memory_space<vmem>>, %arg13: memref<1x16xf32, #tpu.memory_space<vmem>>, %arg14: memref<1x16xf32, #tpu.memory_space<vmem>>, %arg15: memref<1x16xf32, #tpu.memory_space<vmem>>, %arg16: memref<16x4xf32, #tpu.memory_space<vmem>>, %arg17: memref<1x4xf32, #tpu.memory_space<vmem>>, %arg18: memref<2x4xf32, #tpu.memory_space<vmem>>) attributes {dimension_semantics = [#tpu.dimension_semantics<arbitrary>], iteration_bounds = array<i64: 1>, scalar_prefetch = 0 : i64, scratch_operands = 0 : i64, tpu.core_type = #tpu.core_type<tc>, window_params = [{pipeline_mode = #tpu.pipeline_mode<synchronous>, transform_indices = @transform_0, window_bounds = array<i64: 2, 64>}, {pipeline_mode = #tpu.pipeline_mode<synchronous>, transform_indices = @transform_1, window_bounds = array<i64: 2, 16>}, {pipeline_mode = #tpu.pipeline_mode<synchronous>, transform_indices = @transform_2, window_bounds = array<i64: 16, 32>}, {pipeline_mode = #tpu.pipeline_mode<synchronous>, transform_indices = @transform_3, window_bounds = array<i64: 1, 32>}, {pipeline_mode = #tpu.pipeline_mode<synchronous>, transform_indices = @transform_4, window_bounds = array<i64: 1, 32>}, {pipeline_mode = #tpu.pipeline_mode<synchronous>, transform_indices = @transform_5, window_bounds = array<i64: 1, 32>}, {pipeline_mode = #tpu.pipeline_mode<synchronous>, transform_indices = @transform_6, window_bounds = array<i64: 64, 32>}, {pipeline_mode = #tpu.pipeline_mode<synchronous>, transform_indices = @transform_7, window_bounds = array<i64: 32, 32>}, {pipeline_mode = #tpu.pipeline_mode<synchronous>, transform_indices = @transform_8, window_bounds = array<i64: 1, 32>}, {pipeline_mode = #tpu.pipeline_mode<synchronous>, transform_indices = @transform_9, window_bounds = array<i64: 1, 32>}, {pipeline_mode = #tpu.pipeline_mode<synchronous>, transform_indices = @transform_10, window_bounds = array<i64: 1, 32>}, {pipeline_mode = #tpu.pipeline_mode<synchronous>, transform_indices = @transform_11, window_bounds = array<i64: 32, 16>}, {pipeline_mode = #tpu.pipeline_mode<synchronous>, transform_indices = @transform_12, window_bounds = array<i64: 1, 16>}, {pipeline_mode = #tpu.pipeline_mode<synchronous>, transform_indices = @transform_13, window_bounds = array<i64: 1, 16>}, {pipeline_mode = #tpu.pipeline_mode<synchronous>, transform_indices = @transform_14, window_bounds = array<i64: 1, 16>}, {pipeline_mode = #tpu.pipeline_mode<synchronous>, transform_indices = @transform_15, window_bounds = array<i64: 16, 4>}, {pipeline_mode = #tpu.pipeline_mode<synchronous>, transform_indices = @transform_16, window_bounds = array<i64: 1, 4>}, {pipeline_mode = #tpu.pipeline_mode<synchronous>, transform_indices = @transform_17, window_bounds = array<i64: 2, 4>}]} {
    %c0 = arith.constant 0 : index
    %c0_0 = arith.constant 0 : index
    %0 = vector.load %arg1[%c0, %c0_0] : memref<2x64xf32, #tpu.memory_space<vmem>>, vector<2x64xf32>
    %c0_1 = arith.constant 0 : index
    %c0_2 = arith.constant 0 : index
    %1 = vector.load %arg2[%c0_1, %c0_2] : memref<2x16xf32, #tpu.memory_space<vmem>>, vector<2x16xf32>
    %c0_3 = arith.constant 0 : index
    %c0_4 = arith.constant 0 : index
    %2 = vector.load %arg3[%c0_3, %c0_4] : memref<16x32xf32, #tpu.memory_space<vmem>>, vector<16x32xf32>
    %cst = arith.constant dense<0.000000e+00> : vector<2x32xf32>
    %3 = tpu.matmul %1, %2, %cst {dimension_numbers = #tpu.dot_dimension_numbers<[1], [0], [0], [1], [0, 0, 1, 1], [], []>} : vector<2x16xf32>, vector<16x32xf32>, vector<2x32xf32> -> vector<2x32xf32>
    %c0_5 = arith.constant 0 : index
    %c0_6 = arith.constant 0 : index
    %4 = vector.load %arg4[%c0_5, %c0_6] : memref<1x32xf32, #tpu.memory_space<vmem>>, vector<1x32xf32>
    %5 = vector.broadcast %4 : vector<1x32xf32> to vector<2x32xf32>
    %6 = arith.addf %3, %5 : vector<2x32xf32>
    %c0_7 = arith.constant 0 : index
    %c0_8 = arith.constant 0 : index
    %7 = vector.load %arg5[%c0_7, %c0_8] : memref<1x32xf32, #tpu.memory_space<vmem>>, vector<1x32xf32>
    %c0_9 = arith.constant 0 : index
    %c0_10 = arith.constant 0 : index
    %8 = vector.load %arg6[%c0_9, %c0_10] : memref<1x32xf32, #tpu.memory_space<vmem>>, vector<1x32xf32>
    %cst_11 = arith.constant dense<0.000000e+00> : vector<2xf32>
    %9 = vector.multi_reduction <add>, %6, %cst_11 [1] : vector<2x32xf32> to vector<2xf32>
    %10 = vector.shape_cast %9 : vector<2xf32> to vector<2x1xf32>
    %cst_12 = arith.constant 3.200000e+01 : f32
    %11 = vector.broadcast %cst_12 : f32 to vector<2x1xf32>
    %12 = arith.divf %10, %11 : vector<2x1xf32>
    %13 = vector.broadcast %12 : vector<2x1xf32> to vector<2x32xf32>
    %14 = arith.subf %6, %13 : vector<2x32xf32>
    %15 = arith.mulf %14, %14 : vector<2x32xf32>
    %cst_13 = arith.constant dense<0.000000e+00> : vector<2xf32>
    %16 = vector.multi_reduction <add>, %15, %cst_13 [1] : vector<2x32xf32> to vector<2xf32>
    %17 = vector.shape_cast %16 : vector<2xf32> to vector<2x1xf32>
    %cst_14 = arith.constant 3.200000e+01 : f32
    %18 = vector.broadcast %cst_14 : f32 to vector<2x1xf32>
    %19 = arith.divf %17, %18 : vector<2x1xf32>
    %20 = vector.broadcast %12 : vector<2x1xf32> to vector<2x32xf32>
    %21 = arith.subf %6, %20 : vector<2x32xf32>
    %cst_15 = arith.constant 9.99999974E-6 : f32
    %22 = vector.broadcast %cst_15 : f32 to vector<2x1xf32>
    %23 = arith.addf %19, %22 : vector<2x1xf32>
    %24 = math.rsqrt %23 : vector<2x1xf32>
    %25 = vector.broadcast %24 : vector<2x1xf32> to vector<2x32xf32>
    %26 = arith.mulf %21, %25 : vector<2x32xf32>
    %27 = vector.broadcast %7 : vector<1x32xf32> to vector<2x32xf32>
    %28 = arith.mulf %26, %27 : vector<2x32xf32>
    %29 = vector.broadcast %8 : vector<1x32xf32> to vector<2x32xf32>
    %30 = arith.addf %28, %29 : vector<2x32xf32>
    %cst_16 = arith.constant 0.000000e+00 : f32
    %31 = vector.broadcast %cst_16 : f32 to vector<2x32xf32>
    %32 = arith.maximumf %30, %31 : vector<2x32xf32>
    %c0_17 = arith.constant 0 : index
    %c0_18 = arith.constant 0 : index
    %33 = vector.load %arg7[%c0_17, %c0_18] : memref<64x32xf32, #tpu.memory_space<vmem>>, vector<64x32xf32>
    %cst_19 = arith.constant dense<0.000000e+00> : vector<2x32xf32>
    %34 = tpu.matmul %0, %33, %cst_19 {dimension_numbers = #tpu.dot_dimension_numbers<[1], [0], [0], [1], [0, 0, 1, 1], [], []>} : vector<2x64xf32>, vector<64x32xf32>, vector<2x32xf32> -> vector<2x32xf32>
    %c0_20 = arith.constant 0 : index
    %c0_21 = arith.constant 0 : index
    %35 = vector.load %arg8[%c0_20, %c0_21] : memref<32x32xf32, #tpu.memory_space<vmem>>, vector<32x32xf32>
    %cst_22 = arith.constant dense<0.000000e+00> : vector<2x32xf32>
    %36 = tpu.matmul %32, %35, %cst_22 {dimension_numbers = #tpu.dot_dimension_numbers<[1], [0], [0], [1], [0, 0, 1, 1], [], []>} : vector<2x32xf32>, vector<32x32xf32>, vector<2x32xf32> -> vector<2x32xf32>
    %37 = arith.addf %34, %36 : vector<2x32xf32>
    %c0_23 = arith.constant 0 : index
    %c0_24 = arith.constant 0 : index
    %38 = vector.load %arg9[%c0_23, %c0_24] : memref<1x32xf32, #tpu.memory_space<vmem>>, vector<1x32xf32>
    %39 = vector.broadcast %38 : vector<1x32xf32> to vector<2x32xf32>
    %40 = arith.addf %37, %39 : vector<2x32xf32>
    %c0_25 = arith.constant 0 : index
    %c0_26 = arith.constant 0 : index
    %41 = vector.load %arg10[%c0_25, %c0_26] : memref<1x32xf32, #tpu.memory_space<vmem>>, vector<1x32xf32>
    %c0_27 = arith.constant 0 : index
    %c0_28 = arith.constant 0 : index
    %42 = vector.load %arg11[%c0_27, %c0_28] : memref<1x32xf32, #tpu.memory_space<vmem>>, vector<1x32xf32>
    %cst_29 = arith.constant dense<0.000000e+00> : vector<2xf32>
    %43 = vector.multi_reduction <add>, %40, %cst_29 [1] : vector<2x32xf32> to vector<2xf32>
    %44 = vector.shape_cast %43 : vector<2xf32> to vector<2x1xf32>
    %cst_30 = arith.constant 3.200000e+01 : f32
    %45 = vector.broadcast %cst_30 : f32 to vector<2x1xf32>
    %46 = arith.divf %44, %45 : vector<2x1xf32>
    %47 = vector.broadcast %46 : vector<2x1xf32> to vector<2x32xf32>
    %48 = arith.subf %40, %47 : vector<2x32xf32>
    %49 = arith.mulf %48, %48 : vector<2x32xf32>
    %cst_31 = arith.constant dense<0.000000e+00> : vector<2xf32>
    %50 = vector.multi_reduction <add>, %49, %cst_31 [1] : vector<2x32xf32> to vector<2xf32>
    %51 = vector.shape_cast %50 : vector<2xf32> to vector<2x1xf32>
    %cst_32 = arith.constant 3.200000e+01 : f32
    %52 = vector.broadcast %cst_32 : f32 to vector<2x1xf32>
    %53 = arith.divf %51, %52 : vector<2x1xf32>
    %54 = vector.broadcast %46 : vector<2x1xf32> to vector<2x32xf32>
    %55 = arith.subf %40, %54 : vector<2x32xf32>
    %cst_33 = arith.constant 9.99999974E-6 : f32
    %56 = vector.broadcast %cst_33 : f32 to vector<2x1xf32>
    %57 = arith.addf %53, %56 : vector<2x1xf32>
    %58 = math.rsqrt %57 : vector<2x1xf32>
    %59 = vector.broadcast %58 : vector<2x1xf32> to vector<2x32xf32>
    %60 = arith.mulf %55, %59 : vector<2x32xf32>
    %61 = vector.broadcast %41 : vector<1x32xf32> to vector<2x32xf32>
    %62 = arith.mulf %60, %61 : vector<2x32xf32>
    %63 = vector.broadcast %42 : vector<1x32xf32> to vector<2x32xf32>
    %64 = arith.addf %62, %63 : vector<2x32xf32>
    %cst_34 = arith.constant 0.000000e+00 : f32
    %65 = vector.broadcast %cst_34 : f32 to vector<2x32xf32>
    %66 = arith.maximumf %64, %65 : vector<2x32xf32>
    %c0_35 = arith.constant 0 : index
    %c0_36 = arith.constant 0 : index
    %67 = vector.load %arg12[%c0_35, %c0_36] : memref<32x16xf32, #tpu.memory_space<vmem>>, vector<32x16xf32>
    %cst_37 = arith.constant dense<0.000000e+00> : vector<2x16xf32>
    %68 = tpu.matmul %66, %67, %cst_37 {dimension_numbers = #tpu.dot_dimension_numbers<[1], [0], [0], [1], [0, 0, 1, 1], [], []>} : vector<2x32xf32>, vector<32x16xf32>, vector<2x16xf32> -> vector<2x16xf32>
    %c0_38 = arith.constant 0 : index
    %c0_39 = arith.constant 0 : index
    %69 = vector.load %arg13[%c0_38, %c0_39] : memref<1x16xf32, #tpu.memory_space<vmem>>, vector<1x16xf32>
    %70 = vector.broadcast %69 : vector<1x16xf32> to vector<2x16xf32>
    %71 = arith.addf %68, %70 : vector<2x16xf32>
    %c0_40 = arith.constant 0 : index
    %c0_41 = arith.constant 0 : index
    %72 = vector.load %arg14[%c0_40, %c0_41] : memref<1x16xf32, #tpu.memory_space<vmem>>, vector<1x16xf32>
    %c0_42 = arith.constant 0 : index
    %c0_43 = arith.constant 0 : index
    %73 = vector.load %arg15[%c0_42, %c0_43] : memref<1x16xf32, #tpu.memory_space<vmem>>, vector<1x16xf32>
    %cst_44 = arith.constant dense<0.000000e+00> : vector<2xf32>
    %74 = vector.multi_reduction <add>, %71, %cst_44 [1] : vector<2x16xf32> to vector<2xf32>
    %75 = vector.shape_cast %74 : vector<2xf32> to vector<2x1xf32>
    %cst_45 = arith.constant 1.600000e+01 : f32
    %76 = vector.broadcast %cst_45 : f32 to vector<2x1xf32>
    %77 = arith.divf %75, %76 : vector<2x1xf32>
    %78 = vector.broadcast %77 : vector<2x1xf32> to vector<2x16xf32>
    %79 = arith.subf %71, %78 : vector<2x16xf32>
    %80 = arith.mulf %79, %79 : vector<2x16xf32>
    %cst_46 = arith.constant dense<0.000000e+00> : vector<2xf32>
    %81 = vector.multi_reduction <add>, %80, %cst_46 [1] : vector<2x16xf32> to vector<2xf32>
    %82 = vector.shape_cast %81 : vector<2xf32> to vector<2x1xf32>
    %cst_47 = arith.constant 1.600000e+01 : f32
    %83 = vector.broadcast %cst_47 : f32 to vector<2x1xf32>
    %84 = arith.divf %82, %83 : vector<2x1xf32>
    %85 = vector.broadcast %77 : vector<2x1xf32> to vector<2x16xf32>
    %86 = arith.subf %71, %85 : vector<2x16xf32>
    %cst_48 = arith.constant 9.99999974E-6 : f32
    %87 = vector.broadcast %cst_48 : f32 to vector<2x1xf32>
    %88 = arith.addf %84, %87 : vector<2x1xf32>
    %89 = math.rsqrt %88 : vector<2x1xf32>
    %90 = vector.broadcast %89 : vector<2x1xf32> to vector<2x16xf32>
    %91 = arith.mulf %86, %90 : vector<2x16xf32>
    %92 = vector.broadcast %72 : vector<1x16xf32> to vector<2x16xf32>
    %93 = arith.mulf %91, %92 : vector<2x16xf32>
    %94 = vector.broadcast %73 : vector<1x16xf32> to vector<2x16xf32>
    %95 = arith.addf %93, %94 : vector<2x16xf32>
    %cst_49 = arith.constant 0.000000e+00 : f32
    %96 = vector.broadcast %cst_49 : f32 to vector<2x16xf32>
    %97 = arith.maximumf %95, %96 : vector<2x16xf32>
    %c0_50 = arith.constant 0 : index
    %c0_51 = arith.constant 0 : index
    %98 = vector.load %arg16[%c0_50, %c0_51] : memref<16x4xf32, #tpu.memory_space<vmem>>, vector<16x4xf32>
    %cst_52 = arith.constant dense<0.000000e+00> : vector<2x4xf32>
    %99 = tpu.matmul %97, %98, %cst_52 {dimension_numbers = #tpu.dot_dimension_numbers<[1], [0], [0], [1], [0, 0, 1, 1], [], []>} : vector<2x16xf32>, vector<16x4xf32>, vector<2x4xf32> -> vector<2x4xf32>
    %c0_53 = arith.constant 0 : index
    %c0_54 = arith.constant 0 : index
    %100 = vector.load %arg17[%c0_53, %c0_54] : memref<1x4xf32, #tpu.memory_space<vmem>>, vector<1x4xf32>
    %101 = vector.broadcast %100 : vector<1x4xf32> to vector<2x4xf32>
    %102 = arith.addf %99, %101 : vector<2x4xf32>
    %c0_55 = arith.constant 0 : index
    %c0_56 = arith.constant 0 : index
    %103 = vector.load %arg18[%c0_55, %c0_56] : memref<2x4xf32, #tpu.memory_space<vmem>>, vector<2x4xf32>
    tpu.vector_store %arg18[%c0_55, %c0_56], %102 {strides = array<i32>} : memref<2x4xf32, #tpu.memory_space<vmem>>, vector<2x4xf32>,
    return
  }
  func.func @transform_0(%arg0: i32) -> (i32, i32) {
    %c0_i32 = arith.constant 0 : i32
    %c0_i32_0 = arith.constant 0 : i32
    %c0_i32_1 = arith.constant 0 : i32
    return %c0_i32, %c0_i32_0 : i32, i32
  }
  func.func @transform_1(%arg0: i32) -> (i32, i32) {
    %c0_i32 = arith.constant 0 : i32
    %c0_i32_0 = arith.constant 0 : i32
    %c0_i32_1 = arith.constant 0 : i32
    return %c0_i32, %c0_i32_0 : i32, i32
  }
  func.func @transform_2(%arg0: i32) -> (i32, i32) {
    %c0_i32 = arith.constant 0 : i32
    %c0_i32_0 = arith.constant 0 : i32
    %c0_i32_1 = arith.constant 0 : i32
    return %c0_i32, %c0_i32_0 : i32, i32
  }
  func.func @transform_3(%arg0: i32) -> (i32, i32) {
    %c0_i32 = arith.constant 0 : i32
    %c0_i32_0 = arith.constant 0 : i32
    %c0_i32_1 = arith.constant 0 : i32
    return %c0_i32, %c0_i32_0 : i32, i32
  }
  func.func @transform_4(%arg0: i32) -> (i32, i32) {
    %c0_i32 = arith.constant 0 : i32
    %c0_i32_0 = arith.constant 0 : i32
    %c0_i32_1 = arith.constant 0 : i32
    return %c0_i32, %c0_i32_0 : i32, i32
  }
  func.func @transform_5(%arg0: i32) -> (i32, i32) {
    %c0_i32 = arith.constant 0 : i32
    %c0_i32_0 = arith.constant 0 : i32
    %c0_i32_1 = arith.constant 0 : i32
    return %c0_i32, %c0_i32_0 : i32, i32
  }
  func.func @transform_6(%arg0: i32) -> (i32, i32) {
    %c0_i32 = arith.constant 0 : i32
    %c0_i32_0 = arith.constant 0 : i32
    %c0_i32_1 = arith.constant 0 : i32
    return %c0_i32, %c0_i32_0 : i32, i32
  }
  func.func @transform_7(%arg0: i32) -> (i32, i32) {
    %c0_i32 = arith.constant 0 : i32
    %c0_i32_0 = arith.constant 0 : i32
    %c0_i32_1 = arith.constant 0 : i32
    return %c0_i32, %c0_i32_0 : i32, i32
  }
  func.func @transform_8(%arg0: i32) -> (i32, i32) {
    %c0_i32 = arith.constant 0 : i32
    %c0_i32_0 = arith.constant 0 : i32
    %c0_i32_1 = arith.constant 0 : i32
    return %c0_i32, %c0_i32_0 : i32, i32
  }
  func.func @transform_9(%arg0: i32) -> (i32, i32) {
    %c0_i32 = arith.constant 0 : i32
    %c0_i32_0 = arith.constant 0 : i32
    %c0_i32_1 = arith.constant 0 : i32
    return %c0_i32, %c0_i32_0 : i32, i32
  }
  func.func @transform_10(%arg0: i32) -> (i32, i32) {
    %c0_i32 = arith.constant 0 : i32
    %c0_i32_0 = arith.constant 0 : i32
    %c0_i32_1 = arith.constant 0 : i32
    return %c0_i32, %c0_i32_0 : i32, i32
  }
  func.func @transform_11(%arg0: i32) -> (i32, i32) {
    %c0_i32 = arith.constant 0 : i32
    %c0_i32_0 = arith.constant 0 : i32
    %c0_i32_1 = arith.constant 0 : i32
    return %c0_i32, %c0_i32_0 : i32, i32
  }
  func.func @transform_12(%arg0: i32) -> (i32, i32) {
    %c0_i32 = arith.constant 0 : i32
    %c0_i32_0 = arith.constant 0 : i32
    %c0_i32_1 = arith.constant 0 : i32
    return %c0_i32, %c0_i32_0 : i32, i32
  }
  func.func @transform_13(%arg0: i32) -> (i32, i32) {
    %c0_i32 = arith.constant 0 : i32
    %c0_i32_0 = arith.constant 0 : i32
    %c0_i32_1 = arith.constant 0 : i32
    return %c0_i32, %c0_i32_0 : i32, i32
  }
  func.func @transform_14(%arg0: i32) -> (i32, i32) {
    %c0_i32 = arith.constant 0 : i32
    %c0_i32_0 = arith.constant 0 : i32
    %c0_i32_1 = arith.constant 0 : i32
    return %c0_i32, %c0_i32_0 : i32, i32
  }
  func.func @transform_15(%arg0: i32) -> (i32, i32) {
    %c0_i32 = arith.constant 0 : i32
    %c0_i32_0 = arith.constant 0 : i32
    %c0_i32_1 = arith.constant 0 : i32
    return %c0_i32, %c0_i32_0 : i32, i32
  }
  func.func @transform_16(%arg0: i32) -> (i32, i32) {
    %c0_i32 = arith.constant 0 : i32
    %c0_i32_0 = arith.constant 0 : i32
    %c0_i32_1 = arith.constant 0 : i32
    return %c0_i32, %c0_i32_0 : i32, i32
  }
  func.func @transform_17(%arg0: i32) -> (i32, i32) {
    %c0_i32 = arith.constant 0 : i32
    %c0_i32_0 = arith.constant 0 : i32
    %c0_i32_1 = arith.constant 0 : i32
    return %c0_i32, %c0_i32_0 : i32, i32
  }
}

</mosaic_0001>

<bundles_post_ra>
// kernel: tile.9
= control target key start
LH: loop header
LB: loop body
LE: loop exit
PB: predicated region body
PF: predicated region fallthrough
CT: control target
= control target key end

     0   :  { %vm3_vm0 = vcmask 523264   ;;  %s34_s0 = inlined_call_operand.vmem [shape: f32[2,5,64], index: 0, kind: input, shape index: {}]   ;;  %s35_s1 = inlined_call_operand.vmem [shape: f32[10,64], index: 1, kind: output, shape index: {}]  }
   0x1   :  { %v2_v0 = vld [vmem:[%s34_s0] sm:$0x1f]   ;;  %v10_v1 = vld [vmem:[%s34_s0 + $0x8] sm:$0x1f]  }
   0x2   :  { %4 = vst.msk [vmem:[%s35_s1] sm:$0x1f] %vm3_vm0, %v2_v0   ;;  %11 = vst.msk [vmem:[%s35_s1 + $0x5] sm:$0x1f] %vm3_vm0, %v10_v1  }

// kernel: he_biomarker_forward.3
= control target key start
LH: loop header
LB: loop body
LE: loop exit
PB: predicated region body
PF: predicated region fallthrough
CT: control target
= control target key end

     0   :  { %s942_s0 = inlined_call_operand.vmem [shape: f32[2,64], index: 0, kind: input, shape index: {}]   ;;  %s943_s1 = inlined_call_operand.vmem [shape: f32[2,16], index: 1, kind: input, shape index: {}]   ;;  %s944_s2 = inlined_call_operand.vmem [shape: f32[16,32], index: 2, kind: input, shape index: {}]   ;;  %s945_s3 = inlined_call_operand.vmem [shape: f32[1,32], index: 3, kind: input, shape index: {}]   ;;  %s946_s4 = inlined_call_operand.vmem [shape: f32[1,32], index: 4, kind: input, shape index: {}]   ;;  %s947_s5 = inlined_call_operand.vmem [shape: f32[1,32], index: 5, kind: input, shape index: {}]   ;;  %s948_s6 = inlined_call_operand.vmem [shape: f32[64,32], index: 6, kind: input, shape index: {}]   ;;  %s949_s7 = inlined_call_operand.vmem [shape: f32[32,32], index: 7, kind: input, shape index: {}]   ;;  %s950_s8 = inlined_call_operand.vmem [shape: f32[1,32], index: 8, kind: input, shape index: {}]   ;;  %s951_s9 = inlined_call_operand.vmem [shape: f32[1,32], index: 9, kind: input, shape index: {}]   ;;  %s952_s10 = inlined_call_operand.vmem [shape: f32[1,32], index: 10, kind: input, shape index: {}]   ;;  %s953_s11 = inlined_call_operand.vmem [shape: f32[32,16], index: 11, kind: input, shape index: {}]   ;;  %s954_s12 = inlined_call_operand.vmem [shape: f32[1,16], index: 12, kind: input, shape index: {}]   ;;  %s955_s13 = inlined_call_operand.vmem [shape: f32[1,16], index: 13, kind: input, shape index: {}]   ;;  %s956_s14 = inlined_call_operand.vmem [shape: f32[1,16], index: 14, kind: input, shape index: {}]   ;;  %s957_s15 = inlined_call_operand.vmem [shape: f32[16,4], index: 15, kind: input, shape index: {}]   ;;  %s958_s16 = inlined_call_operand.vmem [shape: f32[1,4], index: 16, kind: input, shape index: {}]   ;;  %s959_s17 = inlined_call_operand.hbm [shape: f32[2,4], index: 17, kind: output, shape index: {}]  }
   0x1   :  { %960 = sst [smem:[#allocation5_spill]] %s942_s0 }
   0x2   :  { %961 = sst [smem:[#allocation6_spill]] %s943_s1 }
   0x3   :  { %v60_v0 = vld [vmem:[%s944_s2 + $0x8] sm:$0xff]  ;;  %v712_v1 = vmov 0.0   ;;  %v59_v2 = vld [vmem:[%s944_s2] sm:$0xff]  ;;  %vm713_vm0 = vmmov 0  }
   0x4   :  { %626 = vmatprep.subr.mxu0 %v712_v1  ;;  %630 = vmatprep.mubr.msk.f32.mxu0 %vm713_vm0, %v712_v1 }
   0x5   :  { %22 = vsyncpa [#allocation3], 0  ;;  %627 = vmatpush3.msra.mxu0 %v60_v0  ;;  %s962_s0 = sld [smem:[#allocation6_spill]]  ;;  %vm68_vm1 = vcmask 130048   ;;  %633 = vmatprep.subr.mxu1 %v712_v1  ;;  %v586_v4 = vld [vmem:[%s945_s3] ss:$0 sm:$0xff] }
   0x6   :  { %628 = vmatprep.subr.mxu0 %v712_v1  ;;  %641 = vmatprep.mubr.msk.f32.mxu1 %vm713_vm0, %v712_v1  ;;  %vm144_vm2 = vcmask 254976   ;;  %v181_v14 = vld [vmem:[%s948_s6 + $0x38] sm:$0xff]  ;;  %v180_v15 = vld [vmem:[%s948_s6 + $0x30] sm:$0xff]  ;;  %v179_v17 = vld [vmem:[%s948_s6 + $0x28] sm:$0xff]  ;;  %s963_s24 = sld [smem:[#allocation5_spill]]  ;;  %vm260_vm3 = vcmask 523264  }
   0x7   :  { %629 = vmatpush3.msra.mxu0 %v59_v2  ;;  %v185_v16 = vld [vmem:[%s949_s7 + $0x18] sm:$0xff]  ;;  %v184_v18 = vld [vmem:[%s949_s7 + $0x10] sm:$0xff]  ;;  %v183_v19 = vld [vmem:[%s949_s7 + $0x8] sm:$0xff]  ;;  %vm186_vm4 = vcmask 261120   ;;  %vm458_vm5 = vcmask 123904   ;;  %s714_s27 = smov [#allocation2]  }
   0x8   :  { %644 = vmatprep.subr.mxu0 %v712_v1  ;;  %634 = vmatpush3.msra.mxu1 %v185_v16  ;;  %v178_v20 = vld [vmem:[%s948_s6 + $0x20] sm:$0xff]  ;;  %v177_v22 = vld [vmem:[%s948_s6 + $0x18] sm:$0xff]  ;;  %v176_v23 = vld [vmem:[%s948_s6 + $0x10] sm:$0xff]  ;;  %s578_s28 = sshll.u32 %s714_s27, 4  ;;  %vm570_vm6 = vcmask 25600   ;;  %s579_s28 = int_to_ptr.vmem [resolvable:$true] %s578_s28 }
   0x9   :  { %635 = vmatprep.subr.mxu1 %v712_v1  ;;  %v182_v21 = vld [vmem:[%s949_s7] sm:$0xff]  ;;  %v175_v24 = vld [vmem:[%s948_s6 + $0x8] sm:$0xff]  ;;  %v375_v50 = vld [vmem:[%s953_s11 + $0x18] sm:$0xff]  ;;  %p695_p1 = scmp.lt.s32.totalorder %s579_s28, %s579_s28 }
   0xa   :  { %636 = vmatpush3.msra.mxu1 %v184_v18  ;;  %v174_v25 = vld [vmem:[%s948_s6] sm:$0xff]  ;;  %v374_v51 = vld [vmem:[%s953_s11 + $0x10] sm:$0xff]  ;;  %v373_v52 = vld [vmem:[%s953_s11 + $0x8] sm:$0xff] }
   0xb   :  { %v58_v3 = vld [vmem:[%s962_s0] sm:$0x3]  ;;  %637 = vmatprep.subr.mxu1 %v712_v1 }
   0xc   :  { %631 = vmatmul.mubr.msk.f32.vlgmr.msra.gmra.mxu0 %vm68_vm1, %v58_v3  ;;  %638 = vmatpush3.msra.mxu1 %v183_v19  ;;  %v57_v26 = vld [vmem:[%s963_s24] sm:$0x3] }
   0xd   :  { %660 = vmatprep.mubr.msk.f32.mxu0 %vm713_vm0, %v712_v1  ;;  %645 = vmatpush3.msra.mxu0 %v181_v14  ;;  %v588_v31 = vld [vmem:[%s946_s4] ss:$0 sm:$0xff] }
   0xe   :  { %646 = vmatprep.subr.mxu0 %v712_v1  ;;  %639 = vmatprep.subr.mxu1 %v712_v1  ;;  %v589_v33 = vld [vmem:[%s947_s5] ss:$0 sm:$0xff] }
   0xf   :  { %647 = vmatpush3.msra.mxu0 %v180_v15  ;;  %640 = vmatpush3.msra.mxu1 %v182_v21  ;;  %v592_v40 = vld [vmem:[%s950_s8] ss:$0 sm:$0xff] }
  0x10   :  { %648 = vmatprep.subr.mxu0 %v712_v1  ;;  %663 = vmatprep.subr.mxu1 %v712_v1  ;;  %v372_v53 = vld [vmem:[%s953_s11] sm:$0xff] }
  0x11   :  { %649 = vmatpush3.msra.mxu0 %v179_v17  ;;  %v593_v58 = vld [vmem:[%s951_s9] ss:$0 sm:$0xff] }
  0x12   :  { %650 = vmatprep.subr.mxu0 %v712_v1  ;;  %v594_v60 = vld [vmem:[%s952_s10] ss:$0 sm:$0xff] }
  0x13   :  { %651 = vmatpush3.msra.mxu0 %v178_v20  ;;  %v595_v0 = vld [vmem:[%s954_s12] ss:$0 sm:$0xff] }
  0x14   :  { %652 = vmatprep.subr.mxu0 %v712_v1  ;;  %v597_v17 = vld [vmem:[%s955_s13] ss:$0 sm:$0xff]  ;;  %s690_s13 = scalar_lea.vmem %s579_s28, 32 }
  0x15   :  { %653 = vmatpush3.msra.mxu0 %v177_v22  ;;  %v598_v19 = vld [vmem:[%s956_s14] ss:$0 sm:$0xff]  ;;  %p691_p0 = scmp.ne.s32.totalorder %s579_s28, %s690_s13  ;;  %p696_p2 = scmp.lt.s32.totalorder %s690_s13, %s690_s13 }
  0x16   :  { %654 = vmatprep.subr.mxu0 %v712_v1 }
  0x17   :  { %655 = vmatpush3.msra.mxu0 %v176_v23  ;;  %p697_p3 = por %p696_p2, %p695_p1 }
  0x18   :  { %656 = vmatprep.subr.mxu0 %v712_v1 }
  0x19   :  { %657 = vmatpush3.msra.mxu0 %v175_v24  ;;  %p698_p4 = pnand %p697_p3, %p691_p0 }
  0x1a   :  { %658 = vmatprep.subr.mxu0 %v712_v1 }
  0x1b   :  { %659 = vmatpush3.msra.mxu0 %v174_v25 }
  0x1c   :  { %661 = vmatmul.mubr.msk.f32.vlgmr.msra.gmra.mxu0 %vm260_vm3, %v57_v26 }
  0xcc   :  { %v138_v5 = vpop.f32.mrf.mxu0 }
  0xcd   :  { %v139_v6 = vadd.f32 %v586_v4, %v138_v5 }
  0xce   :  { %v632_v7 = vpop.f32.mrf.mxu0 }
  0xcf   :  { %v145_v8 = vsel %vm144_vm2, %v139_v6, 0.0 }
  0xd0   :  { %146 = vadd.xlane.f32.xlu0 %v145_v8 }
  0xdc   :  { %v330_v37 = vpop.f32.mrf.mxu0 }
  0xde   :  { %v662_v38 = vpop.f32.mrf.mxu0 }
 0x159   :  { %v147_v9 = vpop.xlane.xlu0 %146 }
 0x15a   :  { %v149_v10 = vmul.f32 0.03125, %v147_v9 }
 0x15c   :  { %v150_v11 = vsub.f32 %v139_v6, %v149_v10 }
 0x15e   :  { %v151_v12 = vmul.f32 %v150_v11, %v150_v11 }
 0x160   :  { %v152_v13 = vsel %vm144_vm2, %v151_v12, 0.0  ;;  %v488_v12 = vld [vmem:[%s957_s15] sm:$0xff] }
 0x161   :  { %153 = vadd.xlane.f32.xlu0 %v152_v13 }
 0x1ea   :  { %v154_v27 = vpop.xlane.xlu0 %153 }
 0x1eb   :  { %v155_v28 = vmul.f32 0.03125, %v154_v27 }
 0x1ed   :  { %v156_v29 = vadd.f32 1e-05, %v155_v28 }
 0x1ef   :  { %684 = vrsqrt.f32 %v156_v29 }
 0x1fc   :  { %v685_v30 = vpop.eup %684 }
 0x1fd   :  { %v158_v32 = vmul.f32 %v685_v30, %v150_v11  ;;  %v489_v11 = vld [vmem:[%s957_s15 + $0x8] sm:$0xff] }
 0x1ff   :  { %v165_v34 = vmul.f32 %v588_v31, %v158_v32 }
 0x201   :  { %v172_v35 = vadd.f32 %v589_v33, %v165_v34 }
 0x203   :  { %v173_v36 = vmax.f32 %v172_v35, 0.0 }
 0x205   :  { %642 = vmatmul.mubr.msk.f32.vlgmr.msra.gmra.mxu1 %vm186_vm4, %v173_v36 }
 0x206   :  { %671 = vmatprep.mubr.msk.f32.mxu1 %vm713_vm0, %v712_v1  ;;  %664 = vmatpush3.msra.mxu1 %v375_v50 }
 0x207   :  { %665 = vmatprep.subr.mxu1 %v712_v1 }
 0x208   :  { %666 = vmatpush3.msra.mxu1 %v374_v51 }
 0x209   :  { %667 = vmatprep.subr.mxu1 %v712_v1 }
 0x20a   :  { %668 = vmatpush3.msra.mxu1 %v373_v52 }
 0x20b   :  { %669 = vmatprep.subr.mxu1 %v712_v1 }
 0x20c   :  { %670 = vmatpush3.msra.mxu1 %v372_v53 }
 0x20d   :  { %674 = vmatprep.subr.mxu1 %v712_v1 }
 0x2c5   :  { %v256_v39 = vpop.f32.mrf.mxu1 }
 0x2c6   :  { %v331_v41 = vadd.f32 %v330_v37, %v256_v39 }
 0x2c7   :  { %v643_v42 = vpop.f32.mrf.mxu1 }
 0x2c8   :  { %v341_v43 = vadd.f32 %v592_v40, %v331_v41 }
 0x2ca   :  { %v344_v44 = vsel %vm144_vm2, %v341_v43, 0.0 }
 0x2cb   :  { %345 = vadd.xlane.f32.xlu1 %v344_v44 }
 0x354   :  { %v346_v45 = vpop.xlane.xlu1 %345 }
 0x355   :  { %v347_v46 = vmul.f32 0.03125, %v346_v45 }
 0x357   :  { %v348_v47 = vsub.f32 %v341_v43, %v347_v46 }
 0x359   :  { %v349_v48 = vmul.f32 %v348_v47, %v348_v47 }
 0x35b   :  { %v350_v49 = vsel %vm144_vm2, %v349_v48, 0.0 }
 0x35c   :  { %351 = vadd.xlane.f32.xlu1 %v350_v49 }
 0x3e5   :  { %v352_v54 = vpop.xlane.xlu1 %351 }
 0x3e6   :  { %v353_v55 = vmul.f32 0.03125, %v352_v54 }
 0x3e8   :  { %v354_v56 = vadd.f32 1e-05, %v353_v55 }
 0x3ea   :  { %686 = vrsqrt.f32 %v354_v56 }
 0x3f7   :  { %v687_v57 = vpop.eup %686 }
 0x3f8   :  { %v356_v59 = vmul.f32 %v687_v57, %v348_v47 }
 0x3fa   :  { %v363_v61 = vmul.f32 %v593_v58, %v356_v59 }
 0x3fc   :  { %v370_v62 = vadd.f32 %v594_v60, %v363_v61 }
 0x3fe   :  { %v371_v63 = vmax.f32 %v370_v62, 0.0 }
 0x400   :  { %672 = vmatmul.mubr.msk.f32.vlgmr.msra.gmra.mxu1 %vm186_vm4, %v371_v63 }
 0x401   :  { %678 = vmatprep.mubr.msk.f32.mxu1 %vm713_vm0, %v712_v1  ;;  %675 = vmatpush3.msra.mxu1 %v489_v11 }
 0x402   :  { %676 = vmatprep.subr.mxu1 %v712_v1  ;;  %v599_v1 = vld [vmem:[%s958_s16] ss:$0 sm:$0xff] }
 0x403   :  { %677 = vmatpush3.msra.mxu1 %v488_v12 }
 0x4c0   :  { %v452_v2 = vpop.f32.mrf.mxu1 }
 0x4c1   :  { %v453_v3 = vadd.f32 %v595_v0, %v452_v2 }
 0x4c2   :  { %v673_v4 = vpop.f32.mrf.mxu1 }
 0x4c3   :  { %v459_v5 = vsel %vm458_vm5, %v453_v3, 0.0 }
 0x4c4   :  { %460 = vadd.xlane.f32.xlu0 %v459_v5 }
 0x54d   :  { %v461_v6 = vpop.xlane.xlu0 %460 }
 0x54e   :  { %v463_v7 = vmul.f32 0.0625, %v461_v6 }
 0x550   :  { %v464_v8 = vsub.f32 %v453_v3, %v463_v7 }
 0x552   :  { %v465_v9 = vmul.f32 %v464_v8, %v464_v8 }
 0x554   :  { %v466_v10 = vsel %vm458_vm5, %v465_v9, 0.0 }
 0x555   :  { %467 = vadd.xlane.f32.xlu1 %v466_v10 }
 0x5de   :  { %v468_v13 = vpop.xlane.xlu1 %467 }
 0x5df   :  { %v469_v14 = vmul.f32 0.0625, %v468_v13 }
 0x5e1   :  { %v470_v15 = vadd.f32 1e-05, %v469_v14 }
 0x5e3   :  { %688 = vrsqrt.f32 %v470_v15 }
 0x5f0   :  { %v689_v16 = vpop.eup %688 }
 0x5f1   :  { %v472_v18 = vmul.f32 %v689_v16, %v464_v8 }
 0x5f3   :  { %v479_v20 = vmul.f32 %v597_v17, %v472_v18 }
 0x5f5   :  { %v486_v21 = vadd.f32 %v598_v19, %v479_v20 }
 0x5f7   :  { %v487_v22 = vmax.f32 %v486_v21, 0.0 }
 0x5f9   :  { %679 = vmatmul.mubr.msk.f32.vlgmr.msra.gmra.mxu1 %vm68_vm1, %v487_v22 }
 0x6b9   :  { %v566_v23 = vpop.f32.mrf.mxu1 }
 0x6ba   :  { %v567_v24 = vadd.f32 %v599_v1, %v566_v23 }
 0x6bb   :  { %v680_v25 = vpop.f32.mrf.mxu1 }
 0x6bc   :  { %571 = vst.msk [vmem:[#allocation2] sm:$0x3] %vm570_vm6, %v567_v24 }
 0x6bd   :  { %701 = shalt.err (!%p698_p4)
}
 0x6be   :  { %581 = dma.vmem_to_hbm [thread:$0]  %s579_s28, 32, %s959_s17, [#allocation3]  }
 0x6bf   :  { %710 = dma.done.wait [#allocation3], 32  }
 0x6c0   :  { %711 = vsyncadd [#allocation3], 4294967264 }
 0x6c1   :  { %585 = vsyncpa [#allocation3], 1 }

// kernel: he_biomarker_forward.2
= control target key start
LH: loop header
LB: loop body
LE: loop exit
PB: predicated region body
PF: predicated region fallthrough
CT: control target
= control target key end

     0   :  { %s3465_s27 = smov 0   ;;  %s4150_s0 = inlined_call_operand.vmem [shape: f32[10,768], index: 0, kind: input, shape index: {}]   ;;  %s4151_s1 = inlined_call_operand.vmem [shape: f32[768,64], index: 1, kind: input, shape index: {}]   ;;  %s4152_s2 = inlined_call_operand.vmem [shape: f32[10,64], index: 2, kind: input, shape index: {}]   ;;  %s4153_s3 = inlined_call_operand.vmem [shape: f32[10,10], index: 3, kind: input, shape index: {}]   ;;  %s4154_s4 = inlined_call_operand.vmem [shape: f32[2,1,64], index: 4, kind: input, shape index: {}]   ;;  %s4155_s5 = inlined_call_operand.vmem [shape: f32[2,1,64], index: 5, kind: input, shape index: {}]   ;;  %s4156_s6 = inlined_call_operand.vmem [shape: f32[2,64,192], index: 6, kind: input, shape index: {}]   ;;  %s4157_s7 = inlined_call_operand.vmem [shape: f32[2,1,192], index: 7, kind: input, shape index: {}]   ;;  %s4158_s8 = inlined_call_operand.vmem [shape: f32[2,64,64], index: 8, kind: input, shape index: {}]   ;;  %s4159_s9 = inlined_call_operand.vmem [shape: f32[2,1,64], index: 9, kind: input, shape index: {}]   ;;  %s4160_s10 = inlined_call_operand.vmem [shape: f32[2,1,64], index: 10, kind: input, shape index: {}]   ;;  %s4161_s11 = inlined_call_operand.vmem [shape: f32[2,1,64], index: 11, kind: input, shape index: {}]   ;;  %s4162_s12 = inlined_call_operand.vmem [shape: f32[2,64,128], index: 12, kind: input, shape index: {}]   ;;  %s4163_s13 = inlined_call_operand.vmem [shape: f32[2,1,128], index: 13, kind: input, shape index: {}]   ;;  %s4164_s14 = inlined_call_operand.vmem [shape: f32[2,128,64], index: 14, kind: input, shape index: {}]   ;;  %s4165_s15 = inlined_call_operand.vmem [shape: f32[2,1,64], index: 15, kind: input, shape index: {}]   ;;  %s4166_s16 = inlined_call_operand.vmem [shape: f32[1,64], index: 16, kind: input, shape index: {}]   ;;  %s4167_s17 = inlined_call_operand.vmem [shape: f32[1,64], index: 17, kind: input, shape index: {}]   ;;  %s4168_s18 = inlined_call_operand.vmem [shape: f32[2,64], index: 18, kind: output, shape index: {}]  }
   0x1   :  { %4177 = sst [smem:[#allocation4_spill]] %s4150_s0 }
   0x2   :  { %4178 = sst [smem:[#allocation5_spill]] %s4151_s1 }
   0x3   :  { %4179 = sst [smem:[#allocation6_spill]] %s4152_s2 }
   0x4   :  { %4180 = sst [smem:[#allocation7_spill]] %s4153_s3 }
   0x5   :  { %4181 = sst [smem:[#allocation8_spill]] %s4156_s6 }
   0x6   :  { %4182 = sst [smem:[#allocation9_spill]] %s4157_s7 }
   0x7   :  { %4183 = sst [smem:[#allocation10_spill]] %s4158_s8 }
   0x8   :  { %4184 = sst [smem:[#allocation11_spill]] %s4166_s16 }
   0x9   :  { %4185 = sst [smem:[#allocation12_spill]] %s4167_s17 }
   0xa   :  { %4186 = sst [smem:[#allocation13_spill]] %s4168_s18 }
   0xb LB: > { %4187 = sst [smem:[#allocation3_spill]] %s3360_s27  ;;  %s3471_s28 = sadd.s32 4294967295, %s3360_s27   ;;  %s3360_s27 = sphi %s3465_s27, %s28_s27  }
   0xc   : > { %p2863_p0 = scmp.ge.s32.totalorder %s3360_s27, 1  ;;  %p602_p1 = scmp.lt.s32.totalorder %s3360_s27, 3 }
   0xe   : > { %p603_p2 = pnand %p2863_p0, %p602_p1 }
   0xf   : > { %p691_p3 = scmp.lt.s32.totalorder (!%p603_p2), %s3471_s28, 1  ;;  %s4188_s6 = sld [smem:[#allocation8_spill]] (!%p603_p2) }
  0x10   : > { %606 = sbr.rel (%p603_p2) target bundleno = 3848 (0xf08), region = 92  ;;  %s4189_s7 = sld [smem:[#allocation9_spill]] (!%p603_p2) }
  0x11   : > { %s4190_s8 = sld [smem:[#allocation10_spill]] (!%p603_p2)  ;;  %p2873_p4 = scmp.ne.s32.totalorder (!%p603_p2), %s3471_s28, 0 }
  0x15   : > { %s3477_s29 = scalar_select %p691_p3, %s3471_s28, 1 }
  0x16   : > { %s4193_s1 = sld [smem:[#allocation4_spill]] (!%p2873_p4) }
  0x17   : > { %s2926_s22 = sshll.u32 %s3477_s29, 7  ;;  %s2866_s2 = sshll.u32 %s3477_s29, 1 }
  0x18   : > { %s3492_s25 = scalar_lea.vmem %s4188_s6, %s2926_s22  ;;  %s3497_s0 = scalar_lea.vmem %s4189_s7, %s2866_s2 }
  0x19   : > { %s2927_s27 = sshll.u32 %s3477_s29, 6  ;;  %s727_s19 = scalar_lea.vmem %s4163_s13, %s3477_s29 }
  0x1a   : > { %s3507_s20 = scalar_lea.vmem %s4190_s8, %s2927_s27  ;;  %s3520_s7 = scalar_lea.vmem %s4162_s12, %s2927_s27 }
  0x1b   : > { %s3529_s8 = scalar_lea.vmem %s4164_s14, %s2926_s22  ;;  %s735_s23 = scalar_lea.vmem %s4165_s15, %s3477_s29 }
  0x1c   : > { %739 = sbr.rel (%p2873_p4) target bundleno = 306 (0x132), region = 96  ;;  %s4191_s27 = sld [smem:[#allocation5_spill]] (!%p2873_p4) }
  0x1d   : > { %s4194_s6 = sld [smem:[#allocation6_spill]] (!%p2873_p4) }
  0x21   : > { %v741_v63 = vld [vmem:[%s4193_s1 + $0x8] sm:$0xff]  ;;  %vm1075_vm0 = vcmask 523264   ;;  %vm1077_vm1 = vcmask 517120  }
  0x22   : > { %s4192_s2 = smov %s4191_s27  ;;  %v783_v0 = vld [vmem:[%s4191_s27 + $0xf8] sm:$0xff]  ;;  %914 = vmatprep.mubr.f32.mxu0 %v741_v63 }
  0x23   : > { %v815_v1 = vld [vmem:[%s4192_s2 + $0x1f8] sm:$0xff]  ;;  %2930 = vmatprep.subr.mxu0 %v783_v0  ;;  %v782_v4 = vld [vmem:[%s4192_s2 + $0xf0] sm:$0xff]  ;;  %v781_v8 = vld [vmem:[%s4192_s2 + $0xe8] sm:$0xff] }
  0x24   : > { %v767_v2 = vld [vmem:[%s4192_s2 + $0x78] sm:$0xff]  ;;  %2968 = vmatprep.subr.mxu1 %v815_v1  ;;  %v814_v5 = vld [vmem:[%s4192_s2 + $0x1f0] sm:$0xff]  ;;  %v813_v9 = vld [vmem:[%s4192_s2 + $0x1e8] sm:$0xff] }
  0x25   : > { %v799_v3 = vld [vmem:[%s4192_s2 + $0x178] sm:$0xff]  ;;  %2931 = vmatpush3.msra.mxu0 %v767_v2  ;;  %v766_v6 = vld [vmem:[%s4192_s2 + $0x70] sm:$0xff]  ;;  %v765_v10 = vld [vmem:[%s4192_s2 + $0x68] sm:$0xff] }
  0x26   : > { %2969 = vmatpush3.msra.mxu1 %v799_v3  ;;  %v798_v7 = vld [vmem:[%s4192_s2 + $0x170] sm:$0xff]  ;;  %2932 = vmatprep.subr.mxu0 %v782_v4  ;;  %v797_v11 = vld [vmem:[%s4192_s2 + $0x168] sm:$0xff]  ;;  %v780_v12 = vld [vmem:[%s4192_s2 + $0xe0] sm:$0xff] }
  0x27   : > { %2970 = vmatprep.subr.mxu1 %v814_v5  ;;  %2933 = vmatpush3.msra.mxu0 %v766_v6  ;;  %v812_v13 = vld [vmem:[%s4192_s2 + $0x1e0] sm:$0xff]  ;;  %v779_v16 = vld [vmem:[%s4192_s2 + $0xd8] sm:$0xff]  ;;  %v778_v20 = vld [vmem:[%s4192_s2 + $0xd0] sm:$0xff] }
  0x28   : > { %2971 = vmatpush3.msra.mxu1 %v798_v7  ;;  %2934 = vmatprep.subr.mxu0 %v781_v8  ;;  %v764_v14 = vld [vmem:[%s4192_s2 + $0x60] sm:$0xff]  ;;  %v811_v17 = vld [vmem:[%s4192_s2 + $0x1d8] sm:$0xff]  ;;  %v810_v21 = vld [vmem:[%s4192_s2 + $0x1d0] sm:$0xff] }
  0x29   : > { %2972 = vmatprep.subr.mxu1 %v813_v9  ;;  %v796_v15 = vld [vmem:[%s4192_s2 + $0x160] sm:$0xff]  ;;  %2935 = vmatpush3.msra.mxu0 %v765_v10  ;;  %v763_v18 = vld [vmem:[%s4192_s2 + $0x58] sm:$0xff]  ;;  %v762_v22 = vld [vmem:[%s4192_s2 + $0x50] sm:$0xff] }
  0x2a   : > { %2973 = vmatpush3.msra.mxu1 %v797_v11  ;;  %2936 = vmatprep.subr.mxu0 %v780_v12  ;;  %v795_v19 = vld [vmem:[%s4192_s2 + $0x158] sm:$0xff]  ;;  %v794_v23 = vld [vmem:[%s4192_s2 + $0x150] sm:$0xff]  ;;  %v777_v24 = vld [vmem:[%s4192_s2 + $0xc8] sm:$0xff] }
  0x2b   : > { %2974 = vmatprep.subr.mxu1 %v812_v13  ;;  %2937 = vmatpush3.msra.mxu0 %v764_v14  ;;  %v809_v25 = vld [vmem:[%s4192_s2 + $0x1c8] sm:$0xff]  ;;  %v776_v28 = vld [vmem:[%s4192_s2 + $0xc0] sm:$0xff]  ;;  %v775_v32 = vld [vmem:[%s4192_s2 + $0xb8] sm:$0xff] }
  0x2c   : > { %2975 = vmatpush3.msra.mxu1 %v796_v15  ;;  %2938 = vmatprep.subr.mxu0 %v779_v16  ;;  %v761_v26 = vld [vmem:[%s4192_s2 + $0x48] sm:$0xff]  ;;  %v808_v29 = vld [vmem:[%s4192_s2 + $0x1c0] sm:$0xff]  ;;  %v807_v33 = vld [vmem:[%s4192_s2 + $0x1b8] sm:$0xff] }
  0x2d   : > { %2976 = vmatprep.subr.mxu1 %v811_v17  ;;  %2939 = vmatpush3.msra.mxu0 %v763_v18  ;;  %v793_v27 = vld [vmem:[%s4192_s2 + $0x148] sm:$0xff]  ;;  %v760_v30 = vld [vmem:[%s4192_s2 + $0x40] sm:$0xff]  ;;  %v759_v34 = vld [vmem:[%s4192_s2 + $0x38] sm:$0xff] }
  0x2e   : > { %2977 = vmatpush3.msra.mxu1 %v795_v19  ;;  %2940 = vmatprep.subr.mxu0 %v778_v20  ;;  %v792_v31 = vld [vmem:[%s4192_s2 + $0x140] sm:$0xff]  ;;  %v791_v35 = vld [vmem:[%s4192_s2 + $0x138] sm:$0xff]  ;;  %v774_v36 = vld [vmem:[%s4192_s2 + $0xb0] sm:$0xff] }
  0x2f   : > { %2978 = vmatprep.subr.mxu1 %v810_v21  ;;  %2941 = vmatpush3.msra.mxu0 %v762_v22  ;;  %v806_v37 = vld [vmem:[%s4192_s2 + $0x1b0] sm:$0xff]  ;;  %v773_v40 = vld [vmem:[%s4192_s2 + $0xa8] sm:$0xff]  ;;  %v772_v44 = vld [vmem:[%s4192_s2 + $0xa0] sm:$0xff] }
  0x30   : > { %2979 = vmatpush3.msra.mxu1 %v794_v23  ;;  %2942 = vmatprep.subr.mxu0 %v777_v24  ;;  %v758_v38 = vld [vmem:[%s4192_s2 + $0x30] sm:$0xff]  ;;  %v805_v41 = vld [vmem:[%s4192_s2 + $0x1a8] sm:$0xff]  ;;  %v804_v45 = vld [vmem:[%s4192_s2 + $0x1a0] sm:$0xff] }
  0x31   : > { %2980 = vmatprep.subr.mxu1 %v809_v25  ;;  %2943 = vmatpush3.msra.mxu0 %v761_v26  ;;  %v790_v39 = vld [vmem:[%s4192_s2 + $0x130] sm:$0xff]  ;;  %v757_v42 = vld [vmem:[%s4192_s2 + $0x28] sm:$0xff]  ;;  %v756_v46 = vld [vmem:[%s4192_s2 + $0x20] sm:$0xff] }
  0x32   : > { %2981 = vmatpush3.msra.mxu1 %v793_v27  ;;  %2944 = vmatprep.subr.mxu0 %v776_v28  ;;  %v789_v43 = vld [vmem:[%s4192_s2 + $0x128] sm:$0xff]  ;;  %v788_v47 = vld [vmem:[%s4192_s2 + $0x120] sm:$0xff]  ;;  %v771_v48 = vld [vmem:[%s4192_s2 + $0x98] sm:$0xff] }
  0x33   : > { %2982 = vmatprep.subr.mxu1 %v808_v29  ;;  %2945 = vmatpush3.msra.mxu0 %v760_v30  ;;  %v803_v49 = vld [vmem:[%s4192_s2 + $0x198] sm:$0xff]  ;;  %v770_v52 = vld [vmem:[%s4192_s2 + $0x90] sm:$0xff]  ;;  %v769_v56 = vld [vmem:[%s4192_s2 + $0x88] sm:$0xff] }
  0x34   : > { %2983 = vmatpush3.msra.mxu1 %v792_v31  ;;  %2946 = vmatprep.subr.mxu0 %v775_v32  ;;  %v755_v50 = vld [vmem:[%s4192_s2 + $0x18] sm:$0xff]  ;;  %v802_v53 = vld [vmem:[%s4192_s2 + $0x190] sm:$0xff]  ;;  %v801_v57 = vld [vmem:[%s4192_s2 + $0x188] sm:$0xff] }
  0x35   : > { %2984 = vmatprep.subr.mxu1 %v807_v33  ;;  %2947 = vmatpush3.msra.mxu0 %v759_v34  ;;  %v787_v51 = vld [vmem:[%s4192_s2 + $0x118] sm:$0xff]  ;;  %v754_v54 = vld [vmem:[%s4192_s2 + $0x10] sm:$0xff]  ;;  %v753_v58 = vld [vmem:[%s4192_s2 + $0x8] sm:$0xff] }
  0x36   : > { %2985 = vmatpush3.msra.mxu1 %v791_v35  ;;  %2948 = vmatprep.subr.mxu0 %v774_v36  ;;  %v786_v55 = vld [vmem:[%s4192_s2 + $0x110] sm:$0xff]  ;;  %v785_v59 = vld [vmem:[%s4192_s2 + $0x108] sm:$0xff]  ;;  %v768_v60 = vld [vmem:[%s4192_s2 + $0x80] sm:$0xff] }
  0x37   : > { %2986 = vmatprep.subr.mxu1 %v806_v37  ;;  %2949 = vmatpush3.msra.mxu0 %v758_v38  ;;  %v800_v61 = vld [vmem:[%s4192_s2 + $0x180] sm:$0xff]  ;;  %v743_v1 = vld [vmem:[%s4193_s1 + $0x18] sm:$0xff]  ;;  %v742_v3 = vld [vmem:[%s4193_s1 + $0x10] sm:$0xff] }
  0x38   : > { %2987 = vmatpush3.msra.mxu1 %v790_v39  ;;  %2950 = vmatprep.subr.mxu0 %v773_v40  ;;  %v752_v62 = vld [vmem:[%s4192_s2] sm:$0xff]  ;;  %v847_v4 = vld [vmem:[%s4192_s2 + $0x2f8] sm:$0xff]  ;;  %v846_v6 = vld [vmem:[%s4192_s2 + $0x2f0] sm:$0xff] }
  0x39   : > { %2988 = vmatprep.subr.mxu1 %v805_v41  ;;  %2951 = vmatpush3.msra.mxu0 %v757_v42  ;;  %v784_v0 = vld [vmem:[%s4192_s2 + $0x100] sm:$0xff]  ;;  %v831_v5 = vld [vmem:[%s4192_s2 + $0x278] sm:$0xff]  ;;  %v830_v7 = vld [vmem:[%s4192_s2 + $0x270] sm:$0xff] }
  0x3a   : > { %2989 = vmatpush3.msra.mxu1 %v789_v43  ;;  %2952 = vmatprep.subr.mxu0 %v772_v44  ;;  %v740_v2 = vld [vmem:[%s4193_s1] sm:$0xff]  ;;  %v845_v8 = vld [vmem:[%s4192_s2 + $0x2e8] sm:$0xff]  ;;  %v843_v12 = vld [vmem:[%s4192_s2 + $0x2d8] sm:$0xff] }
  0x3b   : > { %2990 = vmatprep.subr.mxu1 %v804_v45  ;;  %2953 = vmatpush3.msra.mxu0 %v756_v46  ;;  %v829_v9 = vld [vmem:[%s4192_s2 + $0x268] sm:$0xff]  ;;  %v844_v10 = vld [vmem:[%s4192_s2 + $0x2e0] sm:$0xff]  ;;  %v827_v13 = vld [vmem:[%s4192_s2 + $0x258] sm:$0xff] }
  0x3c   : > { %2991 = vmatpush3.msra.mxu1 %v788_v47  ;;  %2954 = vmatprep.subr.mxu0 %v771_v48  ;;  %v828_v11 = vld [vmem:[%s4192_s2 + $0x260] sm:$0xff]  ;;  %v842_v14 = vld [vmem:[%s4192_s2 + $0x2d0] sm:$0xff]  ;;  %v841_v16 = vld [vmem:[%s4192_s2 + $0x2c8] sm:$0xff] }
  0x3d   : > { %2992 = vmatprep.subr.mxu1 %v803_v49  ;;  %2955 = vmatpush3.msra.mxu0 %v755_v50  ;;  %v826_v15 = vld [vmem:[%s4192_s2 + $0x250] sm:$0xff]  ;;  %v825_v17 = vld [vmem:[%s4192_s2 + $0x248] sm:$0xff]  ;;  %v840_v18 = vld [vmem:[%s4192_s2 + $0x2c0] sm:$0xff] }
  0x3e   : > { %2993 = vmatpush3.msra.mxu1 %v787_v51  ;;  %2956 = vmatprep.subr.mxu0 %v770_v52  ;;  %v824_v19 = vld [vmem:[%s4192_s2 + $0x240] sm:$0xff]  ;;  %v839_v20 = vld [vmem:[%s4192_s2 + $0x2b8] sm:$0xff]  ;;  %v838_v22 = vld [vmem:[%s4192_s2 + $0x2b0] sm:$0xff] }
  0x3f   : > { %2994 = vmatprep.subr.mxu1 %v802_v53  ;;  %2957 = vmatpush3.msra.mxu0 %v754_v54  ;;  %v823_v21 = vld [vmem:[%s4192_s2 + $0x238] sm:$0xff]  ;;  %v822_v23 = vld [vmem:[%s4192_s2 + $0x230] sm:$0xff]  ;;  %v837_v24 = vld [vmem:[%s4192_s2 + $0x2a8] sm:$0xff] }
  0x40   : > { %2995 = vmatpush3.msra.mxu1 %v786_v55  ;;  %2958 = vmatprep.subr.mxu0 %v769_v56  ;;  %v821_v25 = vld [vmem:[%s4192_s2 + $0x228] sm:$0xff]  ;;  %v836_v26 = vld [vmem:[%s4192_s2 + $0x2a0] sm:$0xff]  ;;  %v747_v27 = vld [vmem:[%s4193_s1 + $0x38] sm:$0x3] }
  0x41   : > { %2996 = vmatprep.subr.mxu1 %v801_v57  ;;  %2959 = vmatpush3.msra.mxu0 %v753_v58  ;;  %v820_v28 = vld [vmem:[%s4192_s2 + $0x220] sm:$0xff]  ;;  %v746_v29 = vld [vmem:[%s4193_s1 + $0x30] sm:$0x3]  ;;  %v835_v30 = vld [vmem:[%s4192_s2 + $0x298] sm:$0xff] }
  0x42   : > { %2997 = vmatpush3.msra.mxu1 %v785_v59  ;;  %2960 = vmatprep.subr.mxu0 %v768_v60  ;;  %v749_v31 = vld [vmem:[%s4193_s1 + $0x48] sm:$0x3]  ;;  %v819_v32 = vld [vmem:[%s4192_s2 + $0x218] sm:$0xff]  ;;  %v834_v33 = vld [vmem:[%s4192_s2 + $0x290] sm:$0xff] }
  0x43   : > { %2998 = vmatprep.subr.mxu1 %v800_v61  ;;  %2961 = vmatpush3.msra.mxu0 %v752_v62  ;;  %v748_v34 = vld [vmem:[%s4193_s1 + $0x40] sm:$0x3]  ;;  %v818_v35 = vld [vmem:[%s4192_s2 + $0x210] sm:$0xff]  ;;  %v833_v36 = vld [vmem:[%s4192_s2 + $0x288] sm:$0xff] }
  0x44   : > { %2999 = vmatpush3.msra.mxu1 %v784_v0  ;;  %989 = vmatprep.mubr.f32.mxu1 %v743_v1  ;;  %v817_v37 = vld [vmem:[%s4192_s2 + $0x208] sm:$0xff]  ;;  %v832_v38 = vld [vmem:[%s4192_s2 + $0x280] sm:$0xff]  ;;  %v751_v41 = vld [vmem:[%s4193_s1 + $0x58] sm:$0x3] }
  0x45   : > { %915 = vmatmul.mubr.f32.vlgmr.msra.gmra.mxu0 %v740_v2  ;;  %990 = vmatmul.mubr.f32.vlgmr.msra.gmra.mxu1 %v742_v3  ;;  %v816_v39 = vld [vmem:[%s4192_s2 + $0x200] sm:$0xff]  ;;  %v745_v40 = vld [vmem:[%s4193_s1 + $0x28] sm:$0xff]  ;;  %v750_v43 = vld [vmem:[%s4193_s1 + $0x50] sm:$0x3] }
  0x46   : > { %3006 = vmatprep.subr.mxu0 %v847_v4  ;;  %3258 = vmatprep.subr.mxu1 %v847_v4  ;;  %v744_v42 = vld [vmem:[%s4193_s1 + $0x20] sm:$0xff]  ;;  %v849_v54 = vld [vmem:[%s4194_s6 + $0x8] sm:$0x3] }
  0x47   : > { %3007 = vmatpush3.msra.mxu0 %v831_v5  ;;  %3274 = vmatpush3.msra.mxu1 %v831_v5  ;;  %v848_v53 = vld [vmem:[%s4194_s6] sm:$0xff] }
  0x48   : > { %3008 = vmatprep.subr.mxu0 %v846_v6  ;;  %3259 = vmatprep.subr.mxu1 %v846_v6 }
  0x49   : > { %3009 = vmatpush3.msra.mxu0 %v830_v7  ;;  %3275 = vmatpush3.msra.mxu1 %v830_v7 }
  0x4a   : > { %3010 = vmatprep.subr.mxu0 %v845_v8  ;;  %3260 = vmatprep.subr.mxu1 %v845_v8 }
  0x4b   : > { %3011 = vmatpush3.msra.mxu0 %v829_v9  ;;  %3276 = vmatpush3.msra.mxu1 %v829_v9 }
  0x4c   : > { %3012 = vmatprep.subr.mxu0 %v844_v10  ;;  %3261 = vmatprep.subr.mxu1 %v844_v10 }
  0x4d   : > { %3013 = vmatpush3.msra.mxu0 %v828_v11  ;;  %3277 = vmatpush3.msra.mxu1 %v828_v11 }
  0x4e   : > { %3014 = vmatprep.subr.mxu0 %v843_v12  ;;  %3262 = vmatprep.subr.mxu1 %v843_v12 }
  0x4f   : > { %3015 = vmatpush3.msra.mxu0 %v827_v13  ;;  %3278 = vmatpush3.msra.mxu1 %v827_v13 }
  0x50   : > { %3016 = vmatprep.subr.mxu0 %v842_v14  ;;  %3263 = vmatprep.subr.mxu1 %v842_v14 }
  0x51   : > { %3017 = vmatpush3.msra.mxu0 %v826_v15  ;;  %3279 = vmatpush3.msra.mxu1 %v826_v15 }
  0x52   : > { %3018 = vmatprep.subr.mxu0 %v841_v16  ;;  %3264 = vmatprep.subr.mxu1 %v841_v16 }
  0x53   : > { %3019 = vmatpush3.msra.mxu0 %v825_v17  ;;  %3280 = vmatpush3.msra.mxu1 %v825_v17 }
  0x54   : > { %3020 = vmatprep.subr.mxu0 %v840_v18  ;;  %3265 = vmatprep.subr.mxu1 %v840_v18 }
  0x55   : > { %3021 = vmatpush3.msra.mxu0 %v824_v19  ;;  %3281 = vmatpush3.msra.mxu1 %v824_v19 }
  0x56   : > { %3022 = vmatprep.subr.mxu0 %v839_v20  ;;  %3266 = vmatprep.subr.mxu1 %v839_v20 }
  0x57   : > { %3023 = vmatpush3.msra.mxu0 %v823_v21  ;;  %3282 = vmatpush3.msra.mxu1 %v823_v21 }
  0x58   : > { %3024 = vmatprep.subr.mxu0 %v838_v22  ;;  %3267 = vmatprep.subr.mxu1 %v838_v22 }
  0x59   : > { %3025 = vmatpush3.msra.mxu0 %v822_v23  ;;  %3283 = vmatpush3.msra.mxu1 %v822_v23 }
  0x5a   : > { %3026 = vmatprep.subr.mxu0 %v837_v24  ;;  %3268 = vmatprep.subr.mxu1 %v837_v24 }
  0x5b   : > { %3027 = vmatpush3.msra.mxu0 %v821_v25  ;;  %3284 = vmatpush3.msra.mxu1 %v821_v25 }
  0x5c   : > { %3028 = vmatprep.subr.mxu0 %v836_v26  ;;  %3269 = vmatprep.subr.mxu1 %v836_v26 }
  0x5d   : > { %919 = vmatprep.mubr.f32.mxu0 %v747_v27  ;;  %3029 = vmatpush3.msra.mxu0 %v820_v28 }
  0x5e   : > { %3285 = vmatpush3.msra.mxu1 %v820_v28  ;;  %920 = vmatmul.mubr.f32.gmra.mxu0 %v746_v29 }
  0x5f   : > { %3030 = vmatprep.subr.mxu0 %v835_v30  ;;  %3270 = vmatprep.subr.mxu1 %v835_v30 }
  0x60   : > { %994 = vmatprep.mubr.f32.mxu1 %v749_v31  ;;  %3031 = vmatpush3.msra.mxu0 %v819_v32 }
  0x61   : > { %3286 = vmatpush3.msra.mxu1 %v819_v32  ;;  %3032 = vmatprep.subr.mxu0 %v834_v33 }
  0x62   : > { %995 = vmatmul.mubr.f32.gmra.mxu1 %v748_v34  ;;  %3271 = vmatprep.subr.mxu1 %v834_v33 }
  0x63   : > { %3033 = vmatpush3.msra.mxu0 %v818_v35  ;;  %3287 = vmatpush3.msra.mxu1 %v818_v35 }
  0x64   : > { %3034 = vmatprep.subr.mxu0 %v833_v36  ;;  %3272 = vmatprep.subr.mxu1 %v833_v36 }
  0x65   : > { %3035 = vmatpush3.msra.mxu0 %v817_v37  ;;  %3288 = vmatpush3.msra.mxu1 %v817_v37 }
  0x66   : > { %3036 = vmatprep.subr.mxu0 %v832_v38  ;;  %3273 = vmatprep.subr.mxu1 %v832_v38 }
  0x67   : > { %3037 = vmatpush3.msra.mxu0 %v816_v39  ;;  %3289 = vmatpush3.msra.mxu1 %v816_v39 }
  0x68   : > { %1064 = vmatprep.mubr.f32.mxu0 %v745_v40  ;;  %1069 = vmatprep.mubr.f32.mxu1 %v751_v41 }
  0x69   : > { %1065 = vmatmul.mubr.f32.vlgmr.msra.gmra.mxu0 %v744_v42  ;;  %1070 = vmatmul.mubr.f32.vlgmr.msra.gmra.mxu1 %v750_v43 }
 0x105   : > { %v2962_v44 = vpop.f32.mrf.mxu0  ;;  %v3000_v45 = vpop.f32.mrf.mxu1 }
 0x107   : > { %v2963_v46 = vpop.f32.mrf.mxu0  ;;  %v3001_v48 = vpop.f32.mrf.mxu1 }
 0x108   : > { %v2964_v51 = vadd.f32 %v2963_v46, %v2962_v44  ;;  %v3002_v61 = vadd.f32 %v3001_v48, %v3000_v45 }
 0x10a   : > { %v917_v56 = vadd.f32 %v2964_v51, %v848_v53 }
 0x10c   : > { %v992_v0 = vadd.f32 %v3002_v61, %v917_v56 }
 0x11e   : > { %v2965_v47 = vpop.f32.mrf.mxu0 }
 0x120   : > { %v2966_v49 = vpop.f32.mrf.mxu0 }
 0x121   : > { %v2967_v52 = vadd.f32 %v2966_v49, %v2965_v47 }
 0x122   : > { %v3003_v50 = vpop.f32.mrf.mxu1 }
 0x123   : > { %v922_v57 = vadd.f32 %v2967_v52, %v849_v54 }
 0x124   : > { %v3004_v55 = vpop.f32.mrf.mxu1 }
 0x125   : > { %v3005_v58 = vadd.f32 %v3004_v55, %v3003_v50 }
 0x127   : > { %v997_v1 = vadd.f32 %v3005_v58, %v922_v57 }
 0x129   : > { %v3038_v59 = vpop.f32.mrf.mxu0  ;;  %v3041_v60 = vpop.f32.mrf.mxu1 }
 0x12b   : > { %v3039_v62 = vpop.f32.mrf.mxu0  ;;  %v3042_v63 = vpop.f32.mrf.mxu1 }
 0x12c   : > { %v3040_v2 = vadd.f32 %v3039_v62, %v3038_v59  ;;  %v3043_v3 = vadd.f32 %v3042_v63, %v3041_v60 }
 0x12e   : > { %v1067_v4 = vadd.f32 %v3040_v2, %v992_v0  ;;  %v1072_v5 = vadd.f32 %v3043_v3, %v997_v1 }
 0x130   : > { %1076 = vst.msk [vmem:[#allocation2] sm:$0xff] %vm1075_vm0, %v1067_v4 }
 0x131   : > { %1078 = vst.msk [vmem:[#allocation2 + $0x8] sm:$0x3] %vm1077_vm1, %v1072_v5 }
 0x132 PF: > { %vm1083_vm2 = vcmask 523264   ;;  %vm1087_vm3 = vcmask 517120   ;;  %v1143_v20 = vld [vmem:[%s3492_s25 + $0x78] sm:$0xff]  ;;  %v1142_v21 = vld [vmem:[%s3492_s25 + $0x70] sm:$0xff]  ;;  %v1141_v22 = vld [vmem:[%s3492_s25 + $0x68] sm:$0xff]  ;;  %v3362_v25 = vmov 0.0   ;;  %s4195_s17 = scalar_lea.vmem %s4154_s4, %s3477_s29  ;;  %s4196_s22 = scalar_lea.vmem %s4155_s5, %s3477_s29  ;;  %v1146_v53 = vlaneseq }
 0x133   : > { %1178 = vmatprep.subr.mxu1 %v1143_v20  ;;  %v1140_v23 = vld [vmem:[%s3492_s25 + $0x60] sm:$0xff]  ;;  %v1139_v24 = vld [vmem:[%s3492_s25 + $0x58] sm:$0xff]  ;;  %1226 = vmatprep.mubr.f32.mxu1 %v3362_v25  ;;  %v1138_v26 = vld [vmem:[%s3492_s25 + $0x50] sm:$0xff]  ;;  %vm1255_vm4 = vcmask 130048   ;;  %s3363_s16 = smov 48   ;;  %s3364_s3 = smov 112  }
 0x134   : > { %1179 = vmatpush1.msra.mxu1 %v1142_v21  ;;  %v1137_v27 = vld [vmem:[%s3492_s25 + $0x48] sm:$0xff]  ;;  %v1136_v28 = vld [vmem:[%s3492_s25 + $0x40] sm:$0xff]  ;;  %v1135_v29 = vld [vmem:[%s3492_s25 + $0x38] sm:$0xff]  ;;  %v1147_v54 = vshrl.u32 %v1146_v53, 7  ;;  %vm1373_vm5 = vcmask 1041408   ;;  %s4197_s24 = sld [smem:[#allocation7_spill]]  ;;  %s4200_s30 = scalar_lea.vmem %s4161_s11, %s3477_s29 }
 0x135   : > { %1180 = vmatprep.subr.mxu1 %v1141_v22  ;;  %v1134_v30 = vld [vmem:[%s3492_s25 + $0x30] sm:$0xff]  ;;  %v1133_v31 = vld [vmem:[%s3492_s25 + $0x28] sm:$0xff]  ;;  %v1132_v32 = vld [vmem:[%s3492_s25 + $0x20] sm:$0xff]  ;;  %vm1347_vm6 = vcmask 74752   ;;  %vm1343_vm7 = vcmask 80896   ;;  %s3368_s18 = smov 80  }
 0x136   : > { %1181 = vmatpush1.msra.mxu1 %v1140_v23  ;;  %v1131_v33 = vld [vmem:[%s3492_s25 + $0x18] sm:$0xff]  ;;  %v1130_v34 = vld [vmem:[%s3492_s25 + $0x10] sm:$0xff]  ;;  %v1129_v35 = vld [vmem:[%s3492_s25 + $0x8] sm:$0xff]  ;;  %v1148_v55 = vsub.s32 0, %v1147_v54  ;;  %v1152_v2 = vsub.s32 1, %v1147_v54  ;;  %p2921_p5 = scmp.ne.s32.totalorder %s3471_s28, 1 }
 0x137   : > { %v3866_v6 = vld [vmem:[#allocation2] sm:$0xff]  ;;  %1182 = vmatprep.subr.mxu1 %v1139_v24  ;;  %s4203_s27 = sld [smem:[#allocation13_spill]] (!%p2921_p5) }
 0x138   : > { %v3868_v7 = vld [vmem:[#allocation2 + $0x8] sm:$0x3]  ;;  %v1084_v8 = vsel %vm1083_vm2, %v3866_v6, 0.0  ;;  %1183 = vmatpush1.msra.mxu1 %v1138_v26  ;;  %v1128_v36 = vld [vmem:[%s3492_s25] sm:$0xff]  ;;  %s3367_s25 = smov 16  }
 0x139   : > { %1085 = vadd.xlane.f32.xlu0 %v1084_v8  ;;  %v1088_v9 = vsel %vm1087_vm3, %v3868_v7, 0.0  ;;  %1184 = vmatprep.subr.mxu1 %v1137_v27  ;;  %v2874_v44 = vld [vmem:[%s4195_s17] ss:$0 sm:$0xff]  ;;  %s3366_s17 = smov 32  }
 0x13a   : > { %1185 = vmatpush1.msra.mxu1 %v1136_v28  ;;  %v2875_v46 = vld [vmem:[%s4196_s22] ss:$0 sm:$0xff]  ;;  %s3369_s22 = smov 96  }
 0x13b   : > { %1186 = vmatprep.subr.mxu1 %v1135_v29  ;;  %v1144_v56 = vld [vmem:[%s3497_s0] sm:$0x3]  ;;  %s3365_s0 = smov 64  }
 0x13c   : > { %1187 = vmatpush1.msra.mxu1 %v1134_v30  ;;  %v1149_v57 = vrot.slane %v1144_v56, %v1148_v55  ;;  %v1153_v8 = vrot.slane %v1144_v56, %v1152_v2 }
 0x13d   : > { %1089 = vadd.xlane.f32.xlu0 %v1088_v9  ;;  %1188 = vmatprep.subr.mxu1 %v1133_v31 }
 0x13e   : > { %1189 = vmatpush1.msra.mxu1 %v1132_v32 }
 0x13f   : > { %1190 = vmatprep.subr.mxu1 %v1131_v33 }
 0x140   : > { %1191 = vmatpush1.msra.mxu1 %v1130_v34 }
 0x141   : > { %1192 = vmatprep.subr.mxu1 %v1129_v35 }
 0x142   : > { %1193 = vmatpush1.msra.mxu1 %v1128_v36 }
 0x1c2   : > { %v1086_v10 = vpop.xlane.xlu0 %1085 }
 0x1c3   : > { %v1092_v11 = vmul.f32 0.015625, %v1086_v10 }
 0x1c5   : > { %v1094_v12 = vsub.f32 %v3866_v6, %v1092_v11 }
 0x1c6   : > { %v1090_v13 = vpop.xlane.xlu0 %1089 }
 0x1c7   : > { %v1093_v14 = vmul.f32 0.015625, %v1090_v13  ;;  %v1096_v15 = vmul.f32 %v1094_v12, %v1094_v12  ;;  %v3946_v13 = vld [vmem:[%s4197_s24 + $0x8] sm:$0x3] }
 0x1c9   : > { %v1095_v16 = vsub.f32 %v3868_v7, %v1093_v14  ;;  %v1098_v17 = vsel %vm1083_vm2, %v1096_v15, 0.0 }
 0x1ca   : > { %1099 = vadd.xlane.f32.xlu1 %v1098_v17 }
 0x1cb   : > { %v1097_v18 = vmul.f32 %v1095_v16, %v1095_v16 }
 0x1cd   : > { %v1101_v19 = vsel %vm1087_vm3, %v1097_v18, 0.0 }
 0x1ce   : > { %1102 = vadd.xlane.f32.xlu1 %v1101_v19 }
 0x253   : > { %v1100_v37 = vpop.xlane.xlu1 %1099 }
 0x254   : > { %v1104_v38 = vmul.f32 0.015625, %v1100_v37 }
 0x256   : > { %v1106_v39 = vadd.f32 1e-12, %v1104_v38 }
 0x257   : > { %v1103_v40 = vpop.xlane.xlu1 %1102 }
 0x258   : > { %3306 = vrsqrt.f32 %v1106_v39  ;;  %v1105_v41 = vmul.f32 0.015625, %v1103_v40 }
 0x25a   : > { %v1107_v42 = vadd.f32 1e-12, %v1105_v41 }
 0x25c   : > { %3308 = vrsqrt.f32 %v1107_v42 }
 0x265   : > { %v3307_v43 = vpop.eup %3306 }
 0x266   : > { %v1110_v45 = vmul.f32 %v3307_v43, %v1094_v12 }
 0x268   : > { %v1118_v47 = vmul.f32 %v2874_v44, %v1110_v45 }
 0x269   : > { %v3309_v48 = vpop.eup %3308 }
 0x26a   : > { %v1126_v49 = vadd.f32 %v2875_v46, %v1118_v47  ;;  %v1111_v50 = vmul.f32 %v3309_v48, %v1095_v16  ;;  %v3951_v16 = vld [vmem:[%s4197_s24] sm:$0xff] }
 0x26c   : > { %2876 = vmatmul.mubr.msk.f32.vlgmr.msra.gmra.mxu1 %vm1083_vm2, %v1126_v49  ;;  %v1119_v51 = vmul.f32 %v2874_v44, %v1111_v50 }
 0x26d   : > { %1232 = vmatprep.mubr.f32.mxu1 %v3362_v25 }
 0x26e   : > { %v1127_v52 = vadd.f32 %v2875_v46, %v1119_v51 }
 0x270   : > { %2877 = vmatmul.mubr.msk.f32.gmra.mxu1 %vm1083_vm2, %v1127_v52 }
 0x32c   : > { %v1228_v58 = vpop.f32.mrf.mxu1 }
 0x32d   : > { %v3907_v59 = vadd.f32 %v1228_v58, %v1149_v57 }
 0x32e   : > { %v1230_v60 = vpop.f32.mrf.mxu1 }
 0x32f   : > { %1456 = vrot.lane.b32.xlu1 %v3907_v59, %s3363_s16  ;;  %3124 = vmatprep.mubr.msk.f32.mxu1 %vm1255_vm4, %v3907_v59  ;;  %v3935_v11 = vadd.f32 %v1230_v60, %v1153_v8 }
 0x330   : > { %v1234_v61 = vpop.f32.mrf.mxu1 }
 0x331   : > { %v3912_v62 = vadd.f32 %v1234_v61, %v1149_v57 }
 0x332   : > { %v1236_v5 = vpop.f32.mrf.mxu1 }
 0x333   : > { %1452 = vrot.lane.b32.xlu1 %v3907_v59, %s3364_s3  ;;  %1458 = vrot.lane.b32.xlu0 %v3912_v62, %s3363_s16  ;;  %v3928_v10 = vadd.f32 %v1236_v5, %v1153_v8  ;;  %v1241_v5 = vld [vmem:[%s3507_s20 + $0x10] sm:$0xff]  ;;  %s4202_s16 = sld [smem:[#allocation12_spill]] (!%p2921_p5) }
 0x337   : > { %1454 = vrot.lane.b32.xlu1 %v3912_v62, %s3364_s3  ;;  %1253 = vrot.lane.b32.xlu0 %v3912_v62, %s3365_s0 }
 0x33b   : > { %1251 = vrot.lane.b32.xlu1 %v3907_v59, %s3365_s0 }
 0x3a1   : > { %v1457_v63 = vpop.permute.xlu1 %1456 }
 0x3a5   : > { %v1459_v0 = vpop.permute.xlu0 %1458  ;;  %v1453_v1 = vpop.permute.xlu1 %1452 }
 0x3a6   : > { %3134 = vmatprep.subr.msk.mxu0 %vm1255_vm4, %v1459_v0  ;;  %3138 = vmatprep.mubr.msk.f32.mxu0 %vm1255_vm4, %v1453_v1 }
 0x3a7   : > { %3135 = vmatpush3.xpose.msk.msra.mxu0 %vm1255_vm4, %v1459_v0 }
 0x3a8   : > { %3136 = vmatprep.subr.msk.mxu0 %vm1255_vm4, %v1457_v63 }
 0x3a9   : > { %v1254_v3 = vpop.permute.xlu0 %1253  ;;  %v1455_v4 = vpop.permute.xlu1 %1454 }
 0x3aa   : > { %3120 = vmatprep.subr.msk.mxu1 %vm1255_vm4, %v1254_v3 }
 0x3ab   : > { %3121 = vmatpush3.xpose.msk.msra.mxu1 %vm1255_vm4, %v1254_v3  ;;  %3137 = vmatpush3.xpose.msk.msra.mxu0 %vm1255_vm4, %v1457_v63  ;;  %v1242_v63 = vld [vmem:[%s3507_s20 + $0x18] sm:$0xff] }
 0x3ad   : > { %v1252_v9 = vpop.permute.xlu1 %1251 }
 0x3ae   : > { %3122 = vmatprep.subr.msk.mxu1 %vm1255_vm4, %v1252_v9  ;;  %3139 = vmatmul.mubr.msk.f32.vlgmr.msra.gmra.mxu0 %vm1255_vm4, %v1455_v4 }
 0x3af   : > { %3123 = vmatpush3.xpose.msk.msra.mxu1 %vm1255_vm4, %v1252_v9 }
 0x3b0   : > { %3127 = vmatprep.subr.msk.mxu1 %vm1373_vm5, %v3928_v10 }
 0x3b2   : > { %3125 = vmatmul.mubr.msk.f32.vlgmr.msra.gmra.mxu1 %vm1255_vm4, %v3912_v62 }
 0x3b3   : > { %3128 = vmatpush3.msk.msra.mxu1 %vm1373_vm5, %v3928_v10 }
 0x3b4   : > { %3129 = vmatprep.subr.mxu1 %v3935_v11 }
 0x3b5   : > { %3130 = vmatpush3.msra.mxu1 %v3935_v11 }
 0x3b6   : > { %3148 = vmatprep.subr.mxu1 %v1242_v63 }
 0x46e   : > { %v3140_v12 = vpop.f32.mrf.mxu0 }
 0x46f   : > { %v1544_v14 = vmul.f32 0.25, %v3140_v12 }
 0x470   : > { %v1534_v15 = vpop.f32.mrf.mxu0 }
 0x471   : > { %v1543_v17 = vmul.f32 0.25, %v1534_v15  ;;  %v1546_v18 = vadd.f32 %v1544_v14, %v3946_v13 }
 0x472   : > { %v3126_v22 = vpop.f32.mrf.mxu1 }
 0x473   : > { %v1550_v19 = vsel %vm1347_vm6, %v1546_v18, -inf  ;;  %v1545_v20 = vadd.f32 %v1543_v17, %v3951_v16  ;;  %v1340_v41 = vmul.f32 0.25, %v3126_v22 }
 0x474   : > { %1551 = vmax.xlane.f32.xlu1 %v1550_v19  ;;  %v1330_v23 = vpop.f32.mrf.mxu1  ;;  %v1239_v19 = vld [vmem:[%s3507_s20] sm:$0xff] }
 0x475   : > { %v1547_v21 = vsel %vm1343_vm7, %v1545_v20, -inf  ;;  %v1339_v24 = vmul.f32 0.25, %v1330_v23  ;;  %v1342_v42 = vadd.f32 %v1340_v41, %v3946_v13 }
 0x476   : > { %1548 = vmax.xlane.f32.xlu0 %v1547_v21 }
 0x477   : > { %v1341_v25 = vadd.f32 %v1339_v24, %v3951_v16  ;;  %v1348_v43 = vsel %vm1347_vm6, %v1342_v42, -inf }
 0x479   : > { %v1344_v26 = vsel %vm1343_vm7, %v1341_v25, -inf }
 0x485   : > { %1570 = vrot.lane.b32.xlu1 %v3935_v11, %s3364_s3 }
 0x4a9   : > { %1345 = vmax.xlane.f32.xlu1 %v1344_v26 }
 0x4fd   : > { %v1552_v27 = vpop.xlane.xlu1 %1551 }
 0x4fe   : > { %v1554_v28 = vsub.f32 %v1546_v18, %v1552_v27  ;;  %v1240_v18 = vld [vmem:[%s3507_s20 + $0x8] sm:$0xff] }
 0x4ff   : > { %v1549_v29 = vpop.xlane.xlu0 %1548 }
 0x500   : > { %v1557_v30 = vmul.f32 1.442695, %v1554_v28  ;;  %v1553_v31 = vsub.f32 %v1545_v20, %v1549_v29 }
 0x501   : > { %v1571_v37 = vpop.permute.xlu1 %1570 }
 0x502   : > { %3310 = vpow2.f32 %v1557_v30  ;;  %v1555_v32 = vmul.f32 1.442695, %v1553_v31 }
 0x504   : > { %3312 = vpow2.f32 %v1555_v32 }
 0x50f   : > { %v3311_v33 = vpop.eup %3310 }
 0x510   : > { %v1562_v34 = vsel %vm1347_vm6, %v3311_v33, 0.0 }
 0x511   : > { %v3313_v35 = vpop.eup %3312  ;;  %1563 = vadd.xlane.f32.xlu0 %v1562_v34 }
 0x512   : > { %v1559_v36 = vsel %vm1343_vm7, %v3313_v35, 0.0 }
 0x515   : > { %1560 = vadd.xlane.f32.xlu0 %v1559_v36 }
 0x52b   : > { %1572 = vrot.lane.b32.xlu0 %v3928_v10, %s3364_s3  ;;  %s4198_s3 = scalar_lea.vmem %s4159_s9, %s3477_s29 }
 0x532   : > { %v1346_v38 = vpop.xlane.xlu1 %1345 }
 0x533   : > { %v1351_v39 = vsub.f32 %v1341_v25, %v1346_v38 }
 0x535   : > { %v1353_v40 = vmul.f32 1.442695, %v1351_v39 }
 0x537   : > { %3314 = vpow2.f32 %v1353_v40 }
 0x544   : > { %v3315_v44 = vpop.eup %3314 }
 0x545   : > { %v1357_v45 = vsel %vm1343_vm7, %v3315_v44, 0.0 }
 0x54a   : > { %1349 = vmax.xlane.f32.xlu0 %v1348_v43 }
 0x54e   : > { %1358 = vadd.xlane.f32.xlu0 %v1357_v45 }
 0x564   : > { %1826 = vrot.lane.b32.xlu0 %v3912_v62, %s3366_s17 }
 0x568   : > { %2114 = vrot.lane.b32.xlu0 %v3912_v62, %s3367_s25 }
 0x56c   : > { %2108 = vrot.lane.b32.xlu0 %v3907_v59, %s3368_s18 }
 0x59a   : > { %v1564_v46 = vpop.xlane.xlu0 %1563 }
 0x59b   : > { %3316 = vrcp.f32 %v1564_v46 }
 0x59e   : > { %v1561_v47 = vpop.xlane.xlu0 %1560 }
 0x59f   : > { %3318 = vrcp.f32 %v1561_v47 }
 0x5a2   : > { %v1573_v48 = vpop.permute.xlu0 %1572 }
 0x5a3   : > { %3141 = vmatprep.subr.msk.mxu0 %vm1373_vm5, %v1573_v48 }
 0x5a4   : > { %3142 = vmatpush3.msk.msra.mxu0 %vm1373_vm5, %v1573_v48 }
 0x5a5   : > { %3143 = vmatprep.subr.mxu0 %v1571_v37 }
 0x5a6   : > { %3144 = vmatpush3.msra.mxu0 %v1571_v37 }
 0x5a7   : > { %3155 = vmatprep.subr.mxu0 %v1240_v18 }
 0x5a8   : > { %v3317_v49 = vpop.eup %3316 }
 0x5a9   : > { %v1568_v52 = vmul.f32 %v3317_v49, %v3311_v33 }
 0x5ac   : > { %v3319_v50 = vpop.eup %3318 }
 0x5ad   : > { %v1567_v51 = vmul.f32 %v3319_v50, %v3313_v35 }
 0x5af   : > { %3145 = vmatprep.mubr.msk.f32.mxu0 %vm1343_vm7, %v1567_v51 }
 0x5b0   : > { %3146 = vmatmul.mubr.msk.f32.vlgmr.msra.gmra.mxu0 %vm1343_vm7, %v1568_v52 }
 0x5b1   : > { %3156 = vmatpush3.msra.mxu0 %v1240_v18 }
 0x5b2   : > { %3157 = vmatprep.subr.mxu0 %v1239_v19 }
 0x5b3   : > { %3158 = vmatpush3.msra.mxu0 %v1239_v19 }
 0x5d3   : > { %v1350_v53 = vpop.xlane.xlu0 %1349 }
 0x5d4   : > { %v1352_v54 = vsub.f32 %v1342_v42, %v1350_v53 }
 0x5d6   : > { %v1355_v55 = vmul.f32 1.442695, %v1352_v54 }
 0x5d7   : > { %v1359_v56 = vpop.xlane.xlu0 %1358 }
 0x5d8   : > { %3320 = vpow2.f32 %v1355_v55 }
 0x5d9   : > { %3322 = vrcp.f32 %v1359_v56 }
 0x5db   : > { %v1827_v8 = vpop.permute.xlu0 %1826 }
 0x5e5   : > { %v3321_v57 = vpop.eup %3320 }
 0x5e6   : > { %v3323_v58 = vpop.eup %3322  ;;  %v1360_v60 = vsel %vm1347_vm6, %v3321_v57, 0.0 }
 0x5e7   : > { %1361 = vadd.xlane.f32.xlu1 %v1360_v60  ;;  %v1365_v61 = vmul.f32 %v3323_v58, %v3315_v44 }
 0x5e9   : > { %3131 = vmatprep.mubr.msk.f32.mxu1 %vm1343_vm7, %v1365_v61 }
 0x5f8   : > { %1824 = vrot.lane.b32.xlu1 %v3907_v59, %s3366_s17 }
 0x5fc   : > { %1820 = vrot.lane.b32.xlu1 %v3907_v59, %s3369_s22 }
 0x600   : > { %1822 = vrot.lane.b32.xlu1 %v3912_v62, %s3369_s22 }
 0x604   : > { %2112 = vrot.lane.b32.xlu1 %v3907_v59, %s3367_s25  ;;  %v2115_v59 = vpop.permute.xlu0 %2114 }
 0x608   : > { %2110 = vrot.lane.b32.xlu1 %v3912_v62, %s3368_s18  ;;  %v2109_v14 = vpop.permute.xlu0 %2108 }
 0x670   : > { %v1362_v0 = vpop.xlane.xlu1 %1361  ;;  %v3147_v2 = vpop.f32.mrf.mxu0 }
 0x671   : > { %3324 = vrcp.f32 %v1362_v0 }
 0x672   : > { %v1649_v9 = vpop.f32.mrf.mxu0 }
 0x674   : > { %v1825_v1 = vpop.permute.xlu1 %1824 }
 0x678   : > { %v1821_v12 = vpop.permute.xlu1 %1820 }
 0x67c   : > { %v1823_v62 = vpop.permute.xlu1 %1822 }
 0x67e   : > { %v3325_v3 = vpop.eup %3324 }
 0x67f   : > { %v1366_v4 = vmul.f32 %v3325_v3, %v3321_v57 }
 0x680   : > { %v2113_v15 = vpop.permute.xlu1 %2112 }
 0x681   : > { %3132 = vmatmul.mubr.msk.f32.vlgmr.msra.gmra.mxu1 %vm1343_vm7, %v1366_v4 }
 0x682   : > { %3149 = vmatpush3.msra.mxu1 %v1242_v63  ;;  %3152 = vmatprep.mubr.msk.f32.mxu1 %vm1255_vm4, %v1649_v9 }
 0x683   : > { %3150 = vmatprep.subr.mxu1 %v1241_v5 }
 0x684   : > { %3151 = vmatpush3.msra.mxu1 %v1241_v5  ;;  %v2111_v17 = vpop.permute.xlu1 %2110 }
 0x685   : > { %3162 = vmatprep.subr.msk.mxu1 %vm1255_vm4, %v1827_v8  ;;  %3153 = vmatmul.mubr.msk.f32.vlgmr.msra.gmra.mxu1 %vm1255_vm4, %v3147_v2 }
 0x686   : > { %3163 = vmatpush3.xpose.msk.msra.mxu1 %vm1255_vm4, %v1827_v8  ;;  %3166 = vmatprep.mubr.msk.f32.mxu1 %vm1255_vm4, %v1821_v12 }
 0x687   : > { %3164 = vmatprep.subr.msk.mxu1 %vm1255_vm4, %v1825_v1 }
 0x68a   : > { %3165 = vmatpush3.xpose.msk.msra.mxu1 %vm1255_vm4, %v1825_v1 }
 0x68b   : > { %3183 = vmatprep.subr.msk.mxu1 %vm1255_vm4, %v2115_v59 }
 0x68d   : > { %3167 = vmatmul.mubr.msk.f32.vlgmr.msra.gmra.mxu1 %vm1255_vm4, %v1823_v62 }
 0x68e   : > { %3184 = vmatpush3.xpose.msk.msra.mxu1 %vm1255_vm4, %v2115_v59  ;;  %3187 = vmatprep.mubr.msk.f32.mxu1 %vm1255_vm4, %v2109_v14 }
 0x68f   : > { %3185 = vmatprep.subr.msk.mxu1 %vm1255_vm4, %v2113_v15 }
 0x692   : > { %3186 = vmatpush3.xpose.msk.msra.mxu1 %vm1255_vm4, %v2113_v15 }
 0x695   : > { %3188 = vmatmul.mubr.msk.f32.vlgmr.msra.gmra.mxu1 %vm1255_vm4, %v2111_v17 }
 0x741   : > { %v3133_v20 = vpop.f32.mrf.mxu1 }
 0x743   : > { %v1443_v21 = vpop.f32.mrf.mxu1 }
 0x744   : > { %3159 = vmatprep.mubr.msk.f32.mxu0 %vm1255_vm4, %v1443_v21  ;;  %v1245_v21 = vld [vmem:[%s3507_s20 + $0x30] sm:$0xff] }
 0x745   : > { %3160 = vmatmul.mubr.msk.f32.vlgmr.msra.gmra.mxu0 %vm1255_vm4, %v3133_v20  ;;  %v4011_v22 = vpop.f32.mrf.mxu1  ;;  %v1246_v20 = vld [vmem:[%s3507_s20 + $0x38] sm:$0xff] }
 0x747   : > { %v4013_v23 = vpop.f32.mrf.mxu1 }
 0x74d   : > { %v3168_v24 = vpop.f32.mrf.mxu1 }
 0x74e   : > { %v1912_v25 = vmul.f32 0.25, %v3168_v24 }
 0x74f   : > { %v1902_v26 = vpop.f32.mrf.mxu1 }
 0x750   : > { %v1911_v27 = vmul.f32 0.25, %v1902_v26  ;;  %v1914_v28 = vadd.f32 %v1912_v25, %v3946_v13 }
 0x752   : > { %v1918_v29 = vsel %vm1347_vm6, %v1914_v28, -inf  ;;  %v1913_v30 = vadd.f32 %v1911_v27, %v3951_v16 }
 0x753   : > { %1919 = vmax.xlane.f32.xlu1 %v1918_v29 }
 0x754   : > { %v1915_v31 = vsel %vm1343_vm7, %v1913_v30, -inf }
 0x755   : > { %1916 = vmax.xlane.f32.xlu0 %v1915_v31  ;;  %v3189_v32 = vpop.f32.mrf.mxu1 }
 0x756   : > { %v2200_v50 = vmul.f32 0.25, %v3189_v32 }
 0x757   : > { %v2190_v33 = vpop.f32.mrf.mxu1 }
 0x758   : > { %v2199_v34 = vmul.f32 0.25, %v2190_v33  ;;  %v2202_v51 = vadd.f32 %v2200_v50, %v3946_v13  ;;  %v1244_v13 = vld [vmem:[%s3507_s20 + $0x28] sm:$0xff] }
 0x759   : > { %v2456_v50 = vld [vmem:[%s3520_s7 + $0x28] sm:$0xff] }
 0x75a   : > { %v2201_v35 = vadd.f32 %v2199_v34, %v3951_v16  ;;  %v2206_v52 = vsel %vm1347_vm6, %v2202_v51, -inf  ;;  %v2914_v34 = vld [vmem:[%s4198_s3] ss:$0 sm:$0xff] }
 0x75c   : > { %v2203_v36 = vsel %vm1343_vm7, %v2201_v35, -inf }
 0x764   : > { %1937 = vrot.lane.b32.xlu1 %v3935_v11, %s3369_s22 }
 0x788   : > { %2204 = vmax.xlane.f32.xlu1 %v2203_v36 }
 0x7dc   : > { %v1920_v37 = vpop.xlane.xlu1 %1919 }
 0x7dd   : > { %v1922_v38 = vsub.f32 %v1914_v28, %v1920_v37 }
 0x7de   : > { %v1917_v39 = vpop.xlane.xlu0 %1916 }
 0x7df   : > { %v1925_v40 = vmul.f32 1.442695, %v1922_v38  ;;  %v1921_v41 = vsub.f32 %v1913_v30, %v1917_v39 }
 0x7e0   : > { %v1938_v16 = vpop.permute.xlu1 %1937 }
 0x7e1   : > { %3326 = vpow2.f32 %v1925_v40  ;;  %v1923_v42 = vmul.f32 1.442695, %v1921_v41 }
 0x7e3   : > { %3328 = vpow2.f32 %v1923_v42 }
 0x7ee   : > { %v3327_v43 = vpop.eup %3326 }
 0x7ef   : > { %v1930_v44 = vsel %vm1347_vm6, %v3327_v43, 0.0 }
 0x7f0   : > { %v3329_v45 = vpop.eup %3328  ;;  %1931 = vadd.xlane.f32.xlu0 %v1930_v44 }
 0x7f1   : > { %v1927_v46 = vsel %vm1343_vm7, %v3329_v45, 0.0 }
 0x7f4   : > { %1928 = vadd.xlane.f32.xlu0 %v1927_v46 }
 0x805   : > { %v3161_v9 = vpop.f32.mrf.mxu0 }
 0x806   : > { %v1817_v24 = vadd.f32 %v3161_v9, %v4011_v22 }
 0x807   : > { %v1811_v12 = vpop.f32.mrf.mxu0 }
 0x808   : > { %v1812_v30 = vadd.f32 %v1811_v12, %v4013_v23  ;;  %v2580_v12 = vld [vmem:[%s3529_s8 + $0x78] sm:$0xff] }
 0x80a   : > { %1939 = vrot.lane.b32.xlu0 %v3928_v10, %s3369_s22 }
 0x811   : > { %v2205_v47 = vpop.xlane.xlu1 %2204 }
 0x812   : > { %v2209_v48 = vsub.f32 %v2201_v35, %v2205_v47 }
 0x814   : > { %v2211_v49 = vmul.f32 1.442695, %v2209_v48  ;;  %v2458_v48 = vld [vmem:[%s3520_s7 + $0x38] sm:$0xff] }
 0x815   : > { %3204 = vmatprep.subr.mxu1 %v2458_v48 }
 0x816   : > { %3330 = vpow2.f32 %v2211_v49  ;;  %v2457_v49 = vld [vmem:[%s3520_s7 + $0x30] sm:$0xff]  ;;  %3205 = vmatpush3.msra.mxu1 %v2458_v48 }
 0x817   : > { %3206 = vmatprep.subr.mxu1 %v2457_v49 }
 0x818   : > { %3207 = vmatpush3.msra.mxu1 %v2457_v49  ;;  %v2920_v49 = vld [vmem:[%s735_s23] ss:$0 sm:$0xff]  ;;  %s4201_s23 = sld [smem:[#allocation11_spill]] (!%p2921_p5) }
 0x819   : > { %3208 = vmatprep.subr.mxu1 %v2456_v50 }
 0x81a   : > { %3209 = vmatpush3.msra.mxu1 %v2456_v50 }
 0x823   : > { %v3331_v53 = vpop.eup %3330 }
 0x824   : > { %v2215_v54 = vsel %vm1343_vm7, %v3331_v53, 0.0 }
 0x829   : > { %2207 = vmax.xlane.f32.xlu0 %v2206_v52  ;;  %v2454_v52 = vld [vmem:[%s3520_s7 + $0x18] sm:$0xff] }
 0x82d   : > { %2216 = vadd.xlane.f32.xlu0 %v2215_v54  ;;  %v2452_v54 = vld [vmem:[%s3520_s7 + $0x8] sm:$0xff] }
 0x843   : > { %2227 = vrot.lane.b32.xlu0 %v3928_v10, %s3368_s18  ;;  %v1243_v10 = vld [vmem:[%s3507_s20 + $0x20] sm:$0xff] }
 0x879   : > { %v1932_v55 = vpop.xlane.xlu0 %1931 }
 0x87a   : > { %3332 = vrcp.f32 %v1932_v55  ;;  %v2451_v55 = vld [vmem:[%s3520_s7] sm:$0xff] }
 0x87d   : > { %v1929_v56 = vpop.xlane.xlu0 %1928 }
 0x87e   : > { %3334 = vrcp.f32 %v1929_v56 }
 0x881   : > { %v1940_v57 = vpop.permute.xlu0 %1939 }
 0x882   : > { %3169 = vmatprep.subr.msk.mxu0 %vm1373_vm5, %v1940_v57 }
 0x883   : > { %3170 = vmatpush3.msk.msra.mxu0 %vm1373_vm5, %v1940_v57 }
 0x884   : > { %3171 = vmatprep.subr.mxu0 %v1938_v16 }
 0x885   : > { %3172 = vmatpush3.msra.mxu0 %v1938_v16 }
 0x886   : > { %3176 = vmatprep.subr.mxu0 %v1244_v13 }
 0x887   : > { %v3333_v58 = vpop.eup %3332 }
 0x888   : > { %v1936_v63 = vmul.f32 %v3333_v58, %v3327_v43 }
 0x88b   : > { %v3335_v60 = vpop.eup %3334 }
 0x88c   : > { %v1935_v61 = vmul.f32 %v3335_v60, %v3329_v45 }
 0x88e   : > { %3173 = vmatprep.mubr.msk.f32.mxu0 %vm1343_vm7, %v1935_v61 }
 0x88f   : > { %3174 = vmatmul.mubr.msk.f32.vlgmr.msra.gmra.mxu0 %vm1343_vm7, %v1936_v63 }
 0x890   : > { %3177 = vmatpush3.msra.mxu0 %v1244_v13 }
 0x891   : > { %3178 = vmatprep.subr.mxu0 %v1243_v10 }
 0x892   : > { %3179 = vmatpush3.msra.mxu0 %v1243_v10 }
 0x8b2   : > { %v2208_v0 = vpop.xlane.xlu0 %2207 }
 0x8b3   : > { %v2210_v1 = vsub.f32 %v2202_v51, %v2208_v0  ;;  %v2455_v51 = vld [vmem:[%s3520_s7 + $0x20] sm:$0xff] }
 0x8b4   : > { %3210 = vmatprep.subr.mxu1 %v2455_v51 }
 0x8b5   : > { %v2213_v2 = vmul.f32 1.442695, %v2210_v1  ;;  %3211 = vmatpush3.msra.mxu1 %v2455_v51 }
 0x8b6   : > { %v2217_v3 = vpop.xlane.xlu0 %2216  ;;  %3212 = vmatprep.subr.mxu1 %v2454_v52 }
 0x8b7   : > { %3336 = vpow2.f32 %v2213_v2  ;;  %3213 = vmatpush3.msra.mxu1 %v2454_v52 }
 0x8b8   : > { %3338 = vrcp.f32 %v2217_v3 }
 0x8ba   : > { %v2228_v4 = vpop.permute.xlu0 %2227 }
 0x8bb   : > { %3190 = vmatprep.subr.msk.mxu0 %vm1373_vm5, %v2228_v4 }
 0x8c4   : > { %v3337_v5 = vpop.eup %3336 }
 0x8c5   : > { %v2218_v8 = vsel %vm1347_vm6, %v3337_v5, 0.0  ;;  %v3339_v59 = vpop.eup %3338 }
 0x8c6   : > { %2219 = vadd.xlane.f32.xlu1 %v2218_v8  ;;  %v2223_v17 = vmul.f32 %v3339_v59, %v3331_v53  ;;  %v2453_v53 = vld [vmem:[%s3520_s7 + $0x10] sm:$0xff]  ;;  %s4199_s7 = scalar_lea.vmem %s4160_s10, %s3477_s29 }
 0x8c7   : > { %3214 = vmatprep.subr.mxu1 %v2453_v53  ;;  %v2915_v10 = vld [vmem:[%s4199_s7] ss:$0 sm:$0xff]  ;;  %v2579_v59 = vld [vmem:[%s3529_s8 + $0x70] sm:$0xff] }
 0x8c8   : > { %3215 = vmatpush3.msra.mxu1 %v2453_v53 }
 0x8c9   : > { %3216 = vmatprep.subr.mxu1 %v2452_v54 }
 0x8ca   : > { %3217 = vmatpush3.msra.mxu1 %v2452_v54 }
 0x8cb   : > { %3218 = vmatprep.subr.mxu1 %v2451_v55 }
 0x8cc   : > { %3219 = vmatpush3.msra.mxu1 %v2451_v55 }
 0x8d7   : > { %2225 = vrot.lane.b32.xlu1 %v3935_v11, %s3368_s18 }
 0x94f   : > { %v3175_v62 = vpop.f32.mrf.mxu0  ;;  %v2220_v14 = vpop.xlane.xlu1 %2219 }
 0x950   : > { %3340 = vrcp.f32 %v2220_v14  ;;  %v2577_v14 = vld [vmem:[%s3529_s8 + $0x60] sm:$0xff] }
 0x951   : > { %v2016_v15 = vpop.f32.mrf.mxu0 }
 0x952   : > { %3180 = vmatprep.mubr.msk.f32.mxu0 %vm1255_vm4, %v2016_v15  ;;  %v2576_v15 = vld [vmem:[%s3529_s8 + $0x58] sm:$0xff] }
 0x953   : > { %3181 = vmatmul.mubr.msk.f32.vlgmr.msra.gmra.mxu0 %vm1255_vm4, %v3175_v62  ;;  %v2226_v18 = vpop.permute.xlu1 %2225  ;;  %v2578_v62 = vld [vmem:[%s3529_s8 + $0x68] sm:$0xff] }
 0x954   : > { %3191 = vmatpush3.msk.msra.mxu0 %vm1373_vm5, %v2228_v4  ;;  %3194 = vmatprep.mubr.msk.f32.mxu0 %vm1343_vm7, %v2223_v17  ;;  %v2916_v4 = vld [vmem:[%s4200_s30] ss:$0 sm:$0xff]  ;;  %v2575_v17 = vld [vmem:[%s3529_s8 + $0x50] sm:$0xff]  ;;  %s4204_s30 = smov (!%p2921_p5), %s4203_s27 }
 0x955   : > { %3192 = vmatprep.subr.mxu0 %v2226_v18 }
 0x956   : > { %3193 = vmatpush3.msra.mxu0 %v2226_v18  ;;  %v2574_v18 = vld [vmem:[%s3529_s8 + $0x48] sm:$0xff] }
 0x957   : > { %3197 = vmatprep.subr.mxu0 %v1246_v20 }
 0x95d   : > { %v3341_v11 = vpop.eup %3340 }
 0x95e   : > { %v2224_v19 = vmul.f32 %v3341_v11, %v3337_v5  ;;  %v2573_v11 = vld [vmem:[%s3529_s8 + $0x40] sm:$0xff] }
 0x960   : > { %3195 = vmatmul.mubr.msk.f32.vlgmr.msra.gmra.mxu0 %vm1343_vm7, %v2224_v19  ;;  %v2572_v19 = vld [vmem:[%s3529_s8 + $0x38] sm:$0xff] }
 0x961   : > { %3198 = vmatpush3.msra.mxu0 %v1246_v20  ;;  %v2571_v20 = vld [vmem:[%s3529_s8 + $0x30] sm:$0xff] }
 0x962   : > { %3199 = vmatprep.subr.mxu0 %v1245_v21 }
 0x963   : > { %3200 = vmatpush3.msra.mxu0 %v1245_v21  ;;  %v2570_v21 = vld [vmem:[%s3529_s8 + $0x28] sm:$0xff] }
 0x964   : > { %3223 = vmatprep.subr.mxu0 %v2580_v12 }
 0xa13   : > { %v3182_v25 = vpop.f32.mrf.mxu0 }
 0xa14   : > { %v2107_v26 = vadd.f32 %v3182_v25, %v1817_v24  ;;  %v2569_v24 = vld [vmem:[%s3529_s8 + $0x20] sm:$0xff]  ;;  %v2568_v25 = vld [vmem:[%s3529_s8 + $0x18] sm:$0xff] }
 0xa15   : > { %v2097_v27 = vpop.f32.mrf.mxu0 }
 0xa16   : > { %v2106_v32 = vadd.f32 %v2097_v27, %v1812_v30  ;;  %v2566_v27 = vld [vmem:[%s3529_s8 + $0x8] sm:$0xff] }
 0xa20   : > { %v3196_v28 = vpop.f32.mrf.mxu0 }
 0xa22   : > { %v2304_v29 = vpop.f32.mrf.mxu0 }
 0xa23   : > { %3201 = vmatprep.mubr.msk.f32.mxu0 %vm1255_vm4, %v2304_v29  ;;  %v2917_v29 = vld [vmem:[%s727_s19] ss:$0 sm:$0xff] }
 0xa24   : > { %3202 = vmatmul.mubr.msk.f32.vlgmr.msra.gmra.mxu0 %vm1255_vm4, %v3196_v28  ;;  %v2565_v28 = vld [vmem:[%s3529_s8] sm:$0xff] }
 0xa25   : > { %3224 = vmatpush3.msra.mxu0 %v2580_v12 }
 0xa26   : > { %3225 = vmatprep.subr.mxu0 %v2579_v59 }
 0xa27   : > { %3226 = vmatpush3.msra.mxu0 %v2579_v59 }
 0xa28   : > { %3227 = vmatprep.subr.mxu0 %v2578_v62 }
 0xa29   : > { %3228 = vmatpush3.msra.mxu0 %v2578_v62 }
 0xa2a   : > { %3229 = vmatprep.subr.mxu0 %v2577_v14 }
 0xa2b   : > { %3230 = vmatpush3.msra.mxu0 %v2577_v14 }
 0xa2c   : > { %3231 = vmatprep.subr.mxu0 %v2576_v15 }
 0xa2d   : > { %3232 = vmatpush3.msra.mxu0 %v2576_v15 }
 0xa2e   : > { %3233 = vmatprep.subr.mxu0 %v2575_v17 }
 0xa2f   : > { %3234 = vmatpush3.msra.mxu0 %v2575_v17 }
 0xa30   : > { %3235 = vmatprep.subr.mxu0 %v2574_v18 }
 0xa31   : > { %3236 = vmatpush3.msra.mxu0 %v2574_v18 }
 0xa32   : > { %3237 = vmatprep.subr.mxu0 %v2573_v11 }
 0xa33   : > { %3238 = vmatpush3.msra.mxu0 %v2573_v11 }
 0xa34   : > { %3239 = vmatprep.subr.mxu0 %v2572_v19 }
 0xa35   : > { %3240 = vmatpush3.msra.mxu0 %v2572_v19 }
 0xa36   : > { %3241 = vmatprep.subr.mxu0 %v2571_v20 }
 0xa37   : > { %3242 = vmatpush3.msra.mxu0 %v2571_v20 }
 0xa38   : > { %3243 = vmatprep.subr.mxu0 %v2570_v21 }
 0xa39   : > { %3244 = vmatpush3.msra.mxu0 %v2570_v21 }
 0xa3a   : > { %3245 = vmatprep.subr.mxu0 %v2569_v24 }
 0xa3b   : > { %3246 = vmatpush3.msra.mxu0 %v2569_v24 }
 0xa3c   : > { %3247 = vmatprep.subr.mxu0 %v2568_v25 }
 0xa3d   : > { %3248 = vmatpush3.msra.mxu0 %v2568_v25 }
 0xae4   : > { %v3203_v31 = vpop.f32.mrf.mxu0 }
 0xae5   : > { %v2395_v33 = vadd.f32 %v3203_v31, %v2107_v26  ;;  %v2567_v26 = vld [vmem:[%s3529_s8 + $0x10] sm:$0xff] }
 0xae6   : > { %v2385_v22 = vpop.f32.mrf.mxu0  ;;  %3249 = vmatprep.subr.mxu0 %v2567_v26 }
 0xae7   : > { %v2397_v35 = vadd.f32 %v2395_v33, %v3868_v7  ;;  %v2394_v36 = vadd.f32 %v2385_v22, %v2106_v32  ;;  %3250 = vmatpush3.msra.mxu0 %v2567_v26 }
 0xae8   : > { %3251 = vmatprep.subr.mxu0 %v2566_v27 }
 0xae9   : > { %v4059_v37 = vadd.f32 %v2914_v34, %v2397_v35  ;;  %v2396_v38 = vadd.f32 %v2394_v36, %v3866_v6  ;;  %3252 = vmatpush3.msra.mxu0 %v2566_v27 }
 0xaea   : > { %3253 = vmatprep.subr.mxu0 %v2565_v28 }
 0xaeb   : > { %v4062_v39 = vadd.f32 %v2914_v34, %v2396_v38  ;;  %v2412_v23 = vsel %vm1087_vm3, %v4059_v37, 0.0  ;;  %3254 = vmatpush3.msra.mxu0 %v2565_v28 }
 0xaec   : > { %2413 = vadd.xlane.f32.xlu0 %v2412_v23 }
 0xaed   : > { %v2409_v40 = vsel %vm1083_vm2, %v4062_v39, 0.0 }
 0xaee   : > { %2410 = vadd.xlane.f32.xlu1 %v2409_v40 }
 0xb75   : > { %v2414_v41 = vpop.xlane.xlu0 %2413 }
 0xb76   : > { %v2416_v7 = vmul.f32 0.015625, %v2414_v41 }
 0xb77   : > { %v2411_v42 = vpop.xlane.xlu1 %2410 }
 0xb78   : > { %v2418_v43 = vsub.f32 %v4059_v37, %v2416_v7  ;;  %v2415_v6 = vmul.f32 0.015625, %v2411_v42 }
 0xb7a   : > { %v2417_v44 = vsub.f32 %v4062_v39, %v2415_v6  ;;  %v2420_v45 = vmul.f32 %v2418_v43, %v2418_v43 }
 0xb7c   : > { %v2424_v46 = vsel %vm1087_vm3, %v2420_v45, 0.0  ;;  %v2419_v16 = vmul.f32 %v2417_v44, %v2417_v44 }
 0xb7d   : > { %2425 = vadd.xlane.f32.xlu1 %v2424_v46 }
 0xb7e   : > { %v2421_v47 = vsel %vm1083_vm2, %v2419_v16, 0.0 }
 0xb7f   : > { %2422 = vadd.xlane.f32.xlu0 %v2421_v47 }
 0xc06   : > { %v2426_v56 = vpop.xlane.xlu1 %2425 }
 0xc07   : > { %v2428_v57 = vmul.f32 0.015625, %v2426_v56 }
 0xc08   : > { %v2423_v13 = vpop.xlane.xlu0 %2422 }
 0xc09   : > { %v2430_v58 = vadd.f32 1e-12, %v2428_v57  ;;  %v2427_v60 = vmul.f32 0.015625, %v2423_v13 }
 0xc0b   : > { %3342 = vrsqrt.f32 %v2430_v58  ;;  %v2429_v61 = vadd.f32 1e-12, %v2427_v60 }
 0xc0d   : > { %3344 = vrsqrt.f32 %v2429_v61 }
 0xc18   : > { %v3343_v63 = vpop.eup %3342 }
 0xc19   : > { %v2434_v0 = vmul.f32 %v3343_v63, %v2418_v43 }
 0xc1a   : > { %v3345_v1 = vpop.eup %3344 }
 0xc1b   : > { %v2433_v2 = vmul.f32 %v3345_v1, %v2417_v44  ;;  %v2442_v3 = vmul.f32 %v2915_v10, %v2434_v0 }
 0xc1d   : > { %v2441_v5 = vmul.f32 %v2915_v10, %v2433_v2  ;;  %v2450_v9 = vadd.f32 %v2916_v4, %v2442_v3 }
 0xc1f   : > { %v2449_v8 = vadd.f32 %v2916_v4, %v2441_v5 }
 0xc21   : > { %3220 = vmatprep.mubr.msk.f32.mxu1 %vm1083_vm2, %v2449_v8 }
 0xc22   : > { %3221 = vmatmul.mubr.msk.f32.vlgmr.msra.gmra.mxu1 %vm1083_vm2, %v2450_v9 }
 0xce2   : > { %v3222_v30 = vpop.f32.mrf.mxu1 }
 0xce3   : > { %v2544_v31 = vadd.f32 %v3222_v30, %v2917_v29 }
 0xce4   : > { %v2538_v32 = vpop.f32.mrf.mxu1 }
 0xce5   : > { %v2548_v33 = vmul.f32 %v2544_v31, %v2544_v31  ;;  %v2539_v34 = vadd.f32 %v2917_v29, %v2538_v32 }
 0xce7   : > { %v2550_v22 = vmul.f32 %v2548_v33, %v2544_v31  ;;  %v2547_v35 = vmul.f32 %v2539_v34, %v2539_v34 }
 0xce9   : > { %v2552_v36 = vmul.f32 0.044715, %v2550_v22  ;;  %v2549_v38 = vmul.f32 %v2547_v35, %v2539_v34 }
 0xceb   : > { %v2554_v23 = vadd.f32 %v2552_v36, %v2544_v31  ;;  %v2551_v40 = vmul.f32 0.044715, %v2549_v38 }
 0xced   : > { %v2556_v41 = vmul.f32 0.7978846, %v2554_v23  ;;  %v2553_v7 = vadd.f32 %v2551_v40, %v2539_v34 }
 0xcef   : > { %3346 = vtanh.f32 %v2556_v41  ;;  %v2555_v42 = vmul.f32 0.7978846, %v2553_v7 }
 0xcf1   : > { %3348 = vtanh.f32 %v2555_v42 }
 0xcfc   : > { %v3347_v43 = vpop.eup %3346 }
 0xcfd   : > { %v2560_v6 = vadd.f32 1.0, %v3347_v43 }
 0xcfe   : > { %v3349_v44 = vpop.eup %3348 }
 0xcff   : > { %v2559_v45 = vadd.f32 1.0, %v3349_v44  ;;  %v2562_v46 = vmul.f32 0.5, %v2560_v6 }
 0xd01   : > { %v2561_v16 = vmul.f32 0.5, %v2559_v45  ;;  %v2564_v48 = vmul.f32 %v2562_v46, %v2544_v31 }
 0xd03   : > { %v2563_v47 = vmul.f32 %v2561_v16, %v2539_v34 }
 0xd05   : > { %3255 = vmatprep.mubr.f32.mxu0 %v2563_v47 }
 0xd06   : > { %3256 = vmatmul.mubr.f32.vlgmr.msra.gmra.mxu0 %v2564_v48 }
 0xdc6   : > { %v3257_v50 = vpop.f32.mrf.mxu0 }
 0xdc7   : > { %v2660_v51 = vadd.f32 %v3257_v50, %v2920_v49 }
 0xdc8   : > { %v2654_v52 = vpop.f32.mrf.mxu0 }
 0xdc9   : > { %v2664_v53 = vadd.f32 %v2660_v51, %v4059_v37  ;;  %v2655_v54 = vadd.f32 %v2920_v49, %v2654_v52  ;;  %2670 = sbr.rel (%p2921_p5) target bundleno = 3848 (0xf08), region = 100 }
 0xdcb   : > { %2666 = vst.msk [vmem:[#allocation2 + $0x8] sm:$0x3] %vm1087_vm3, %v2664_v53  ;;  %v2663_v55 = vadd.f32 %v2655_v54, %v4062_v39 }
 0xdcd   : > { %2665 = vst.msk [vmem:[#allocation2] sm:$0xff] %vm1083_vm2, %v2663_v55 }
 0xdce   : > { %vm2673_vm8 = vcmask 516096   ;;  %vm2692_vm9 = vcmask 521221   ;;  %v2671_v59 = vld [vmem:[%s4201_s23] sm:$0x1] }
 0xdcf   : > { %v2674_v56 = vsel %vm2673_vm8, %v2663_v55, 0.0  ;;  %v2693_v57 = vsel %vm2692_vm9, %v2663_v55, 0.0  ;;  %v2672_v14 = vld [vmem:[%s4202_s16] sm:$0x1] }
 0xdd0   : > { %2675 = vadd.xlane.f32.xlu0 %v2674_v56  ;;  %v2922_v18 = vld [vmem:[%s4201_s23] ss:$0 sm:$0xff] }
 0xdd1   : > { %v2923_v20 = vld [vmem:[%s4202_s16] ss:$0 sm:$0xff] }
 0xdd4   : > { %2694 = vadd.xlane.f32.xlu0 %v2693_v57 }
 0xe59   : > { %v2676_v13 = vpop.xlane.xlu0 %2675 }
 0xe5a   : > { %v2677_v37 = vmul.f32 0.015625, %v2676_v13 }
 0xe5c   : > { %v2678_v58 = vsub.f32 %v2663_v55, %v2677_v37 }
 0xe5d   : > { %v2695_v60 = vpop.xlane.xlu0 %2694 }
 0xe5e   : > { %v2696_v61 = vmul.f32 0.015625, %v2695_v60  ;;  %v2679_v63 = vmul.f32 %v2678_v58, %v2678_v58 }
 0xe60   : > { %v2697_v39 = vsub.f32 %v2663_v55, %v2696_v61  ;;  %v2680_v10 = vsel %vm2673_vm8, %v2679_v63, 0.0 }
 0xe61   : > { %2681 = vadd.xlane.f32.xlu1 %v2680_v10 }
 0xe62   : > { %v2698_v0 = vmul.f32 %v2697_v39, %v2697_v39 }
 0xe64   : > { %v2699_v1 = vsel %vm2692_vm9, %v2698_v0, 0.0 }
 0xe65   : > { %2700 = vadd.xlane.f32.xlu1 %v2699_v1 }
 0xeea   : > { %v2682_v2 = vpop.xlane.xlu1 %2681 }
 0xeeb   : > { %v2683_v3 = vmul.f32 0.015625, %v2682_v2 }
 0xeed   : > { %v2684_v4 = vadd.f32 1e-12, %v2683_v3 }
 0xeee   : > { %v2701_v5 = vpop.xlane.xlu1 %2700 }
 0xeef   : > { %3350 = vrsqrt.f32 %v2684_v4  ;;  %v2702_v8 = vmul.f32 0.015625, %v2701_v5 }
 0xef1   : > { %v2703_v9 = vadd.f32 1e-12, %v2702_v8 }
 0xef3   : > { %3352 = vrsqrt.f32 %v2703_v9 }
 0xefc   : > { %v3351_v12 = vpop.eup %3350 }
 0xefd   : > { %v2686_v62 = vmul.f32 %v3351_v12, %v2678_v58 }
 0xeff   : > { %v2687_v15 = vmul.f32 %v2686_v62, %v2671_v59 }
 0xf00   : > { %v3353_v17 = vpop.eup %3352 }
 0xf01   : > { %v2688_v11 = vadd.f32 %v2687_v15, %v2672_v14  ;;  %v2705_v19 = vmul.f32 %v3353_v17, %v2697_v39 }
 0xf03   : > { %2689 = vst.msk [vmem:[%s4203_s27] sm:$0x1] %vm2673_vm8, %v2688_v11  ;;  %v2712_v21 = vmul.f32 %v2922_v18, %v2705_v19 }
 0xf05   : > { %v2719_v24 = vadd.f32 %v2923_v20, %v2712_v21 }
 0xf07   : > { %2720 = vst.msk [vmem:[%s4204_s30 - $0x4] sm:$0x20] %vm2692_vm9, %v2719_v24 }
 0xf08 PF: > { %s4205_s8 = sld [smem:[#allocation3_spill]] }
 0xf0e   : > { %s28_s27 = sadd.s32 1, %s4205_s8  }
 0xf0f   : > { %p25_p6 = scmp.ge.s32.totalorder %s28_s27, 4  }
 0xf11   :  { %27 = sbr.rel (!%p25_p6) target bundleno = 11 (0xb), region = 159 }

</bundles_post_ra>
